<compile_context>
chip_gen: v6e
topology: v6e:2x2x1
jax: 0.10.0
libtpu: 0.0.40
codegen_flags: <defaults>
</compile_context>

<pallas_src>
import functools

import jax
import jax.numpy as jnp
from jax import lax
from jax.experimental import pallas as pl
from jax.experimental.pallas import tpu as pltpu


# ----------------------------------------------------------------------------
# Conv3d kernel: one grid step = one (sample, output-depth tile of Dtile).
#   x_ref    : (1, Dp, Hp, Wp*Cin)        padded sample (resident across dt)
#   w_ref    : (kT, kH, Wp*Cin, Wo*Cout)  banded (Toeplitz-expanded) weights
#   o_ref    : (1, Dtile, Ho, Wo*Cout)    lane-dense conv output tile (bf16)
#   psum_ref : (1, 1, 1, Wo*Cout)         per-step partial sums   (f32, for BN)
#   psq_ref  : (1, 1, 1, Wo*Cout)         per-step partial sum-sq (f32, for BN)
# ----------------------------------------------------------------------------
def _conv3d_banded_kernel(x_ref, w_ref, o_ref, psum_ref, psq_ref, *,
                          kT, kH, sT, sH, Ho, Dtile):
    dt = pl.program_id(1)
    WoCout = o_ref.shape[-1]
    WpCin = x_ref.shape[-1]
    M = Dtile * Ho

    acc = jnp.zeros((M, WoCout), dtype=jnp.float32)
    # kT*kH accumulating MXU matmuls, each (M, Wp*Cin) x (Wp*Cin, Wo*Cout),
    # bf16 operands, f32 accumulation.
    # TODO(synk): fold kH (and optionally kT) into the contraction dim
    # (K = kH*Wp*Cin) via a lane-axis concat to cut the number of RHS pushes.
    for kd in range(kT):
        for kh in range(kH):
            if Dtile > 1:
                # sT == 1 guaranteed by the wrapper when Dtile > 1: the input
                # depths for consecutive output depths are contiguous.
                din0 = dt * Dtile + kd
                if sH == 1:
                    lhs = x_ref[0, pl.ds(din0, Dtile), pl.ds(kh, Ho), :]
                else:
                    lhs = x_ref[0, pl.ds(din0, Dtile), pl.ds(kh, Ho, sH), :]
                lhs = lhs.reshape(M, WpCin)
            else:
                din = dt * sT + kd
                if sH == 1:
                    lhs = x_ref[0, din, pl.ds(kh, Ho), :]
                else:
                    # strided rows gathered at the ref level (only the sH==1
                    # path is exercised by the test below).
                    lhs = x_ref[0, din, pl.ds(kh, Ho, sH), :]
            acc += jnp.dot(lhs, w_ref[kd, kh],
                           preferred_element_type=jnp.float32)

    o_ref[0] = acc.reshape(Dtile, Ho, WoCout).astype(o_ref.dtype)
    # Lane-dense partial BN statistics (folded to per-channel in the wrapper);
    # computed from the f32 accumulator, so bf16 output rounding does not
    # perturb the batch statistics.
    psum_ref[0, 0] = jnp.sum(acc, axis=0, keepdims=True)
    psq_ref[0, 0] = jnp.sum(acc * acc, axis=0, keepdims=True)


# ----------------------------------------------------------------------------
# Fused BatchNorm (precomputed per-lane scale/shift) + ReLU on a lane-folded
# (rows/k, k*Wo*Cout) view.  bf16 in, f32 out (matches the PyTorch module).
# ----------------------------------------------------------------------------
def _bn_relu_kernel(x_ref, scale_ref, shift_ref, o_ref):
    x = x_ref[...].astype(jnp.float32)
    y = x * scale_ref[...] + shift_ref[...]
    o_ref[...] = jnp.maximum(y, 0.0).astype(o_ref.dtype)


def _pick_dtile(Do, Ho, N, sT, target_m=128):
    """Largest divisor of Do with Dtile*Ho <= target_m that still leaves >= 2
    total grid steps (so both v7x TensorCores / the pipeline get work)."""
    if sT != 1:
        return 1
    best = 1
    for d in range(1, Do + 1):
        if Do % d:
            continue
        if d * Ho > max(target_m, Ho):
            break
        if N * (Do // d) >= 2 or d == 1:
            best = d
    return best


def _pick_lane_fold(rows, lane_width, target_lanes=1024, max_lanes=4096):
    """Fold k rows into the lane axis of the BN pass so the block is wide and
    lane-dense (unmasked vst), without blowing up a single tile."""
    best = 1
    for k in range(1, rows + 1):
        if rows % k:
            continue
        lanes = k * lane_width
        if lanes > max_lanes:
            break
        if lanes <= target_lanes:
            best = k
    return best


def _pick_row_block(rows, lane_width, itemsize=4, max_block_bytes=6 * 1024 * 1024):
    """Largest multiple-of-8 row-block dividing `rows` that fits comfortably in
    VMEM and still leaves >=2 grid steps for pipelining; falls back to rows."""
    for cand in (4096, 2048, 1024, 512, 256, 128, 64, 32, 16, 8):
        if (rows % cand == 0 and cand * lane_width * itemsize <= max_block_bytes
                and rows // cand >= 2):
            return cand
    return rows


# ----------------------------------------------------------------------------
# Wrapper: Conv3d (no bias) -> BatchNorm3d (training-mode batch statistics,
# eps=1e-5, affine) -> ReLU.  Input NCDHW, weight OIDHW, output NCDHW (f32).
# ----------------------------------------------------------------------------
def spatio_temporal_conv(x_ncdhw, w_oidhw, gamma, beta,
                         stride=(1, 1, 1), padding=(1, 1, 1), eps=1e-5):
    N, Cin, D, H, W = x_ncdhw.shape
    Cout, _, kT, kH, kW = w_oidhw.shape
    sT, sH, sW = stride
    pT, pH, pW = padding

    Do = (D + 2 * pT - kT) // sT + 1
    Ho = (H + 2 * pH - kH) // sH + 1
    Wo = (W + 2 * pW - kW) // sW + 1

    # ---- layout glue: NCDHW -> padded NDHWC -> (N, Dp, Hp, Wp*Cin), bf16 ----
    # TODO(synk): for real stem layers accept NDHWC input and move the pad /
    # D-halo handling into the kernel (Element-indexed BlockSpec or manual DMA)
    # so the volume is read from HBM exactly once.
    x = jnp.transpose(x_ncdhw, (0, 2, 3, 4, 1)).astype(jnp.bfloat16)
    x = jnp.pad(x, ((0, 0), (pT, pT), (pH, pH), (pW, pW), (0, 0)))
    Dp, Hp, Wp = x.shape[1], x.shape[2], x.shape[3]
    WpCin = Wp * Cin
    WoCout = Wo * Cout
    x = x.reshape(N, Dp, Hp, WpCin)

    # ---- banded (Toeplitz) weight, built once in the wrapper, cast to bf16 ----
    # Wb[kd, kh, (w*sW + kw)*Cin + ci, w*Cout + co] = W[co, ci, kd, kh, kw]
    # TODO(synk): at real stem sizes (W~112) tile Wo / stream (kd,kh) slabs or
    # switch to plain im2col GEMM -- the Wp*Wo-scaling banded weight and the
    # Wp/kW zero-padding FLOP factor stop being a good trade on v7x (64 MiB).
    w_t = jnp.transpose(w_oidhw, (2, 3, 4, 1, 0)).astype(jnp.float32)
    w_flat = w_t.reshape(kT, kH, kW * Cin, Cout)
    wb = jnp.zeros((kT, kH, WpCin, WoCout), jnp.float32)
    for w in range(Wo):
        r0 = w * sW * Cin
        wb = wb.at[:, :, r0:r0 + kW * Cin, w * Cout:(w + 1) * Cout].set(w_flat)
    wb = wb.astype(jnp.bfloat16)

    # ---- conv: fold Dtile output-depth slices into the matmul M dimension ----
    Dtile = _pick_dtile(Do, Ho, N, sT)
    nDt = Do // Dtile

    conv_kernel = functools.partial(
        _conv3d_banded_kernel, kT=kT, kH=kH, sT=sT, sH=sH, Ho=Ho, Dtile=Dtile)

    conv_out, psum, psq = pl.pallas_call(
        conv_kernel,
        out_shape=(
            jax.ShapeDtypeStruct((N, Do, Ho, WoCout), jnp.bfloat16),
            jax.ShapeDtypeStruct((N, nDt, 1, WoCout), jnp.float32),
            jax.ShapeDtypeStruct((N, nDt, 1, WoCout), jnp.float32),
        ),
        grid_spec=pltpu.PrefetchScalarGridSpec(
            num_scalar_prefetch=0,
            grid=(N, nDt),
            in_specs=[
                pl.BlockSpec((1, Dp, Hp, WpCin), lambda n, dt: (n, 0, 0, 0)),
                pl.BlockSpec((kT, kH, WpCin, WoCout), lambda n, dt: (0, 0, 0, 0)),
            ],
            out_specs=(
                pl.BlockSpec((1, Dtile, Ho, WoCout), lambda n, dt: (n, dt, 0, 0)),
                pl.BlockSpec((1, 1, 1, WoCout), lambda n, dt: (n, dt, 0, 0)),
                pl.BlockSpec((1, 1, 1, WoCout), lambda n, dt: (n, dt, 0, 0)),
            ),
        ),
        compiler_params=pltpu.CompilerParams(
            dimension_semantics=("parallel", "parallel"),
            vmem_limit_bytes=32 * 1024 * 1024),
    )(x, wb)

    # ---- BatchNorm3d (training-mode batch stats) from kernel partial sums ----
    cnt = N * Do * Ho * Wo
    ch_sum = jnp.sum(psum, axis=(0, 1, 2)).reshape(Wo, Cout).sum(axis=0)  # (Cout,)
    ch_sq = jnp.sum(psq, axis=(0, 1, 2)).reshape(Wo, Cout).sum(axis=0)    # (Cout,)
    mean = ch_sum / cnt
    # NOTE: E[x^2] - mean^2 in f32; fine at conv-output scales.  Prefer a
    # centered/Welford form if reused for extreme activation magnitudes.
    var = ch_sq / cnt - mean * mean
    scale = gamma.astype(jnp.float32) / jnp.sqrt(var + eps)
    shift = beta.astype(jnp.float32) - mean * scale

    # ---- fused normalize + ReLU on a lane-folded, lane-dense view ----
    rows = N * Do * Ho
    kfold = _pick_lane_fold(rows, WoCout)
    rows2 = rows // kfold
    lanes2 = kfold * WoCout
    x2d = conv_out.reshape(rows2, lanes2)                    # bf16 in
    scale_l = jnp.tile(scale, kfold * Wo).reshape(1, lanes2)  # lane: ((r*Wo+w)*Cout+c)
    shift_l = jnp.tile(shift, kfold * Wo).reshape(1, lanes2)

    tr = _pick_row_block(rows2, lanes2)
    y2d = pl.pallas_call(
        _bn_relu_kernel,
        out_shape=jax.ShapeDtypeStruct((rows2, lanes2), jnp.float32),
        grid_spec=pltpu.PrefetchScalarGridSpec(
            num_scalar_prefetch=0,
            grid=(rows2 // tr,),
            in_specs=[
                pl.BlockSpec((tr, lanes2), lambda i: (i, 0)),
                pl.BlockSpec((1, lanes2), lambda i: (0, 0)),
                pl.BlockSpec((1, lanes2), lambda i: (0, 0)),
            ],
            out_specs=pl.BlockSpec((tr, lanes2), lambda i: (i, 0)),
        ),
        compiler_params=pltpu.CompilerParams(
            dimension_semantics=("parallel",)),
    )(x2d, scale_l, shift_l)

    # back to PyTorch NCDHW layout (f32, matching the module's output dtype)
    y = y2d.reshape(N, Do, Ho, Wo, Cout)
    return jnp.transpose(y, (0, 4, 1, 2, 3))


# ----------------------------------------------------------------------------
# Pure-JAX reference (f32 lax conv + BN + ReLU) for verification.
# ----------------------------------------------------------------------------
def reference(x_ncdhw, w_oidhw, gamma, beta, stride, padding, eps=1e-5):
    conv = lax.conv_general_dilated(
        x_ncdhw.astype(jnp.float32), w_oidhw.astype(jnp.float32),
        window_strides=stride,
        padding=[(p, p) for p in padding],
        dimension_numbers=("NCDHW", "OIDHW", "NCDHW"))
    mean = jnp.mean(conv, axis=(0, 2, 3, 4), keepdims=True)
    var = jnp.mean(jnp.square(conv - mean), axis=(0, 2, 3, 4), keepdims=True)
    g = gamma.reshape(1, -1, 1, 1, 1)
    b = beta.reshape(1, -1, 1, 1, 1)
    y = (conv - mean) / jnp.sqrt(var + eps) * g + b
    return jnp.maximum(y, 0.0)


if __name__ == "__main__":
    key = jax.random.PRNGKey(0)
    k_x, k_w = jax.random.split(key)

    N, Cin, Cout = 2, 4, 8
    D, H, W = 8, 16, 16
    kernel_size = (3, 3, 3)
    stride = (1, 1, 1)
    padding = (1, 1, 1)

    x = jax.random.normal(k_x, (N, Cin, D, H, W), dtype=jnp.float32)
    # Deterministic synthetic Conv3d weight (OIDHW), no bias (bias=False).
    w = jax.random.normal(k_w, (Cout, Cin) + kernel_size,
                          dtype=jnp.float32) * 0.1
    # BatchNorm3d default init: gamma=1, beta=0.
    gamma = jnp.ones((Cout,), dtype=jnp.float32)
    beta = jnp.zeros((Cout,), dtype=jnp.float32)

    out = spatio_temporal_conv(x, w, gamma, beta, stride, padding)
    out = jax.block_until_ready(out)

    ref = reference(x, w, gamma, beta, stride, padding)
    assert out.shape == ref.shape, (out.shape, ref.shape)
    # bf16 operands + bf16 conv intermediate vs. the f32 reference: loosened
    # tolerance (observed error is ~1e-2 worst-case at these scales).
    max_err = float(jnp.max(jnp.abs(out - ref)))
    assert jnp.allclose(out, ref, atol=2e-2, rtol=2e-2), max_err

    print("KERNEL_OK")
</pallas_src>

<mosaic_0001>
module attributes {stable_mosaic.version = 11 : i64} {
  func.func @_conv3d_banded_kernel(%arg0: i32, %arg1: i32, %arg2: memref<1x10x18x72xbf16, #tpu.memory_space<vmem>>, %arg3: memref<3x3x72x128xbf16, #tpu.memory_space<vmem>>, %arg4: memref<1x8x16x128xbf16, #tpu.memory_space<vmem>>, %arg5: memref<1x1x1x128xf32, #tpu.memory_space<vmem>>, %arg6: memref<1x1x1x128xf32, #tpu.memory_space<vmem>>) attributes {dimension_semantics = [#tpu.dimension_semantics<parallel>, #tpu.dimension_semantics<parallel>], iteration_bounds = array<i64: 2, 1>, scalar_prefetch = 0 : i64, scratch_operands = 0 : i64, tpu.core_type = #tpu.core_type<tc>, window_params = [{transform_indices = @transform_0, window_bounds = array<i64: 1, 10, 18, 72>}, {pipeline_mode = #tpu.pipeline_mode<synchronous>, transform_indices = @transform_1, window_bounds = array<i64: 3, 3, 72, 128>}, {transform_indices = @transform_2, window_bounds = array<i64: 1, 8, 16, 128>}, {transform_indices = @transform_3, window_bounds = array<i64: 1, 1, 1, 128>}, {transform_indices = @transform_4, window_bounds = array<i64: 1, 1, 1, 128>}]} {
    %cst = arith.constant 0.000000e+00 : f32
    %0 = vector.broadcast %cst : f32 to vector<128x128xf32>
    %c8_i32 = arith.constant 8 : i32
    %1 = arith.muli %arg1, %c8_i32 : i32
    %c0_i32 = arith.constant 0 : i32
    %2 = arith.addi %1, %c0_i32 : i32
    %c0 = arith.constant 0 : index
    %3 = arith.index_cast %2 : i32 to index
    %c0_0 = arith.constant 0 : index
    %c0_1 = arith.constant 0 : index
    %4 = vector.load %arg2[%c0, %3, %c0_0, %c0_1] : memref<1x10x18x72xbf16, #tpu.memory_space<vmem>>, vector<1x8x16x72xbf16>
    %5 = vector.shape_cast %4 : vector<1x8x16x72xbf16> to vector<8x16x72xbf16>
    %6 = vector.shape_cast %5 : vector<8x16x72xbf16> to vector<128x72xbf16>
    %c0_2 = arith.constant 0 : index
    %c0_3 = arith.constant 0 : index
    %c0_4 = arith.constant 0 : index
    %c0_5 = arith.constant 0 : index
    %7 = vector.load %arg3[%c0_2, %c0_3, %c0_4, %c0_5] : memref<3x3x72x128xbf16, #tpu.memory_space<vmem>>, vector<1x1x72x128xbf16>
    %8 = vector.shape_cast %7 : vector<1x1x72x128xbf16> to vector<72x128xbf16>
    %cst_6 = arith.constant dense<0.000000e+00> : vector<128x128xf32>
    %9 = tpu.matmul %6, %8, %cst_6 {dimension_numbers = #tpu.dot_dimension_numbers<[1], [0], [0], [1], [0, 0, 1, 1], [], []>} : vector<128x72xbf16>, vector<72x128xbf16>, vector<128x128xf32> -> vector<128x128xf32>
    %10 = arith.addf %0, %9 : vector<128x128xf32>
    %c8_i32_7 = arith.constant 8 : i32
    %11 = arith.muli %arg1, %c8_i32_7 : i32
    %c0_i32_8 = arith.constant 0 : i32
    %12 = arith.addi %11, %c0_i32_8 : i32
    %c0_9 = arith.constant 0 : index
    %13 = arith.index_cast %12 : i32 to index
    %c1 = arith.constant 1 : index
    %c0_10 = arith.constant 0 : index
    %14 = vector.load %arg2[%c0_9, %13, %c1, %c0_10] : memref<1x10x18x72xbf16, #tpu.memory_space<vmem>>, vector<1x8x16x72xbf16>
    %15 = vector.shape_cast %14 : vector<1x8x16x72xbf16> to vector<8x16x72xbf16>
    %16 = vector.shape_cast %15 : vector<8x16x72xbf16> to vector<128x72xbf16>
    %c0_11 = arith.constant 0 : index
    %c1_12 = arith.constant 1 : index
    %c0_13 = arith.constant 0 : index
    %c0_14 = arith.constant 0 : index
    %17 = vector.load %arg3[%c0_11, %c1_12, %c0_13, %c0_14] : memref<3x3x72x128xbf16, #tpu.memory_space<vmem>>, vector<1x1x72x128xbf16>
    %18 = vector.shape_cast %17 : vector<1x1x72x128xbf16> to vector<72x128xbf16>
    %cst_15 = arith.constant dense<0.000000e+00> : vector<128x128xf32>
    %19 = tpu.matmul %16, %18, %cst_15 {dimension_numbers = #tpu.dot_dimension_numbers<[1], [0], [0], [1], [0, 0, 1, 1], [], []>} : vector<128x72xbf16>, vector<72x128xbf16>, vector<128x128xf32> -> vector<128x128xf32>
    %20 = arith.addf %10, %19 : vector<128x128xf32>
    %c8_i32_16 = arith.constant 8 : i32
    %21 = arith.muli %arg1, %c8_i32_16 : i32
    %c0_i32_17 = arith.constant 0 : i32
    %22 = arith.addi %21, %c0_i32_17 : i32
    %c0_18 = arith.constant 0 : index
    %23 = arith.index_cast %22 : i32 to index
    %c2 = arith.constant 2 : index
    %c0_19 = arith.constant 0 : index
    %24 = vector.load %arg2[%c0_18, %23, %c2, %c0_19] : memref<1x10x18x72xbf16, #tpu.memory_space<vmem>>, vector<1x8x16x72xbf16>
    %25 = vector.shape_cast %24 : vector<1x8x16x72xbf16> to vector<8x16x72xbf16>
    %26 = vector.shape_cast %25 : vector<8x16x72xbf16> to vector<128x72xbf16>
    %c0_20 = arith.constant 0 : index
    %c2_21 = arith.constant 2 : index
    %c0_22 = arith.constant 0 : index
    %c0_23 = arith.constant 0 : index
    %27 = vector.load %arg3[%c0_20, %c2_21, %c0_22, %c0_23] : memref<3x3x72x128xbf16, #tpu.memory_space<vmem>>, vector<1x1x72x128xbf16>
    %28 = vector.shape_cast %27 : vector<1x1x72x128xbf16> to vector<72x128xbf16>
    %cst_24 = arith.constant dense<0.000000e+00> : vector<128x128xf32>
    %29 = tpu.matmul %26, %28, %cst_24 {dimension_numbers = #tpu.dot_dimension_numbers<[1], [0], [0], [1], [0, 0, 1, 1], [], []>} : vector<128x72xbf16>, vector<72x128xbf16>, vector<128x128xf32> -> vector<128x128xf32>
    %30 = arith.addf %20, %29 : vector<128x128xf32>
    %c8_i32_25 = arith.constant 8 : i32
    %31 = arith.muli %arg1, %c8_i32_25 : i32
    %c1_i32 = arith.constant 1 : i32
    %32 = arith.addi %31, %c1_i32 : i32
    %c0_26 = arith.constant 0 : index
    %33 = arith.index_cast %32 : i32 to index
    %c0_27 = arith.constant 0 : index
    %c0_28 = arith.constant 0 : index
    %34 = vector.load %arg2[%c0_26, %33, %c0_27, %c0_28] : memref<1x10x18x72xbf16, #tpu.memory_space<vmem>>, vector<1x8x16x72xbf16>
    %35 = vector.shape_cast %34 : vector<1x8x16x72xbf16> to vector<8x16x72xbf16>
    %36 = vector.shape_cast %35 : vector<8x16x72xbf16> to vector<128x72xbf16>
    %c1_29 = arith.constant 1 : index
    %c0_30 = arith.constant 0 : index
    %c0_31 = arith.constant 0 : index
    %c0_32 = arith.constant 0 : index
    %37 = vector.load %arg3[%c1_29, %c0_30, %c0_31, %c0_32] : memref<3x3x72x128xbf16, #tpu.memory_space<vmem>>, vector<1x1x72x128xbf16>
    %38 = vector.shape_cast %37 : vector<1x1x72x128xbf16> to vector<72x128xbf16>
    %cst_33 = arith.constant dense<0.000000e+00> : vector<128x128xf32>
    %39 = tpu.matmul %36, %38, %cst_33 {dimension_numbers = #tpu.dot_dimension_numbers<[1], [0], [0], [1], [0, 0, 1, 1], [], []>} : vector<128x72xbf16>, vector<72x128xbf16>, vector<128x128xf32> -> vector<128x128xf32>
    %40 = arith.addf %30, %39 : vector<128x128xf32>
    %c8_i32_34 = arith.constant 8 : i32
    %41 = arith.muli %arg1, %c8_i32_34 : i32
    %c1_i32_35 = arith.constant 1 : i32
    %42 = arith.addi %41, %c1_i32_35 : i32
    %c0_36 = arith.constant 0 : index
    %43 = arith.index_cast %42 : i32 to index
    %c1_37 = arith.constant 1 : index
    %c0_38 = arith.constant 0 : index
    %44 = vector.load %arg2[%c0_36, %43, %c1_37, %c0_38] : memref<1x10x18x72xbf16, #tpu.memory_space<vmem>>, vector<1x8x16x72xbf16>
    %45 = vector.shape_cast %44 : vector<1x8x16x72xbf16> to vector<8x16x72xbf16>
    %46 = vector.shape_cast %45 : vector<8x16x72xbf16> to vector<128x72xbf16>
    %c1_39 = arith.constant 1 : index
    %c1_40 = arith.constant 1 : index
    %c0_41 = arith.constant 0 : index
    %c0_42 = arith.constant 0 : index
    %47 = vector.load %arg3[%c1_39, %c1_40, %c0_41, %c0_42] : memref<3x3x72x128xbf16, #tpu.memory_space<vmem>>, vector<1x1x72x128xbf16>
    %48 = vector.shape_cast %47 : vector<1x1x72x128xbf16> to vector<72x128xbf16>
    %cst_43 = arith.constant dense<0.000000e+00> : vector<128x128xf32>
    %49 = tpu.matmul %46, %48, %cst_43 {dimension_numbers = #tpu.dot_dimension_numbers<[1], [0], [0], [1], [0, 0, 1, 1], [], []>} : vector<128x72xbf16>, vector<72x128xbf16>, vector<128x128xf32> -> vector<128x128xf32>
    %50 = arith.addf %40, %49 : vector<128x128xf32>
    %c8_i32_44 = arith.constant 8 : i32
    %51 = arith.muli %arg1, %c8_i32_44 : i32
    %c1_i32_45 = arith.constant 1 : i32
    %52 = arith.addi %51, %c1_i32_45 : i32
    %c0_46 = arith.constant 0 : index
    %53 = arith.index_cast %52 : i32 to index
    %c2_47 = arith.constant 2 : index
    %c0_48 = arith.constant 0 : index
    %54 = vector.load %arg2[%c0_46, %53, %c2_47, %c0_48] : memref<1x10x18x72xbf16, #tpu.memory_space<vmem>>, vector<1x8x16x72xbf16>
    %55 = vector.shape_cast %54 : vector<1x8x16x72xbf16> to vector<8x16x72xbf16>
    %56 = vector.shape_cast %55 : vector<8x16x72xbf16> to vector<128x72xbf16>
    %c1_49 = arith.constant 1 : index
    %c2_50 = arith.constant 2 : index
    %c0_51 = arith.constant 0 : index
    %c0_52 = arith.constant 0 : index
    %57 = vector.load %arg3[%c1_49, %c2_50, %c0_51, %c0_52] : memref<3x3x72x128xbf16, #tpu.memory_space<vmem>>, vector<1x1x72x128xbf16>
    %58 = vector.shape_cast %57 : vector<1x1x72x128xbf16> to vector<72x128xbf16>
    %cst_53 = arith.constant dense<0.000000e+00> : vector<128x128xf32>
    %59 = tpu.matmul %56, %58, %cst_53 {dimension_numbers = #tpu.dot_dimension_numbers<[1], [0], [0], [1], [0, 0, 1, 1], [], []>} : vector<128x72xbf16>, vector<72x128xbf16>, vector<128x128xf32> -> vector<128x128xf32>
    %60 = arith.addf %50, %59 : vector<128x128xf32>
    %c8_i32_54 = arith.constant 8 : i32
    %61 = arith.muli %arg1, %c8_i32_54 : i32
    %c2_i32 = arith.constant 2 : i32
    %62 = arith.addi %61, %c2_i32 : i32
    %c0_55 = arith.constant 0 : index
    %63 = arith.index_cast %62 : i32 to index
    %c0_56 = arith.constant 0 : index
    %c0_57 = arith.constant 0 : index
    %64 = vector.load %arg2[%c0_55, %63, %c0_56, %c0_57] : memref<1x10x18x72xbf16, #tpu.memory_space<vmem>>, vector<1x8x16x72xbf16>
    %65 = vector.shape_cast %64 : vector<1x8x16x72xbf16> to vector<8x16x72xbf16>
    %66 = vector.shape_cast %65 : vector<8x16x72xbf16> to vector<128x72xbf16>
    %c2_58 = arith.constant 2 : index
    %c0_59 = arith.constant 0 : index
    %c0_60 = arith.constant 0 : index
    %c0_61 = arith.constant 0 : index
    %67 = vector.load %arg3[%c2_58, %c0_59, %c0_60, %c0_61] : memref<3x3x72x128xbf16, #tpu.memory_space<vmem>>, vector<1x1x72x128xbf16>
    %68 = vector.shape_cast %67 : vector<1x1x72x128xbf16> to vector<72x128xbf16>
    %cst_62 = arith.constant dense<0.000000e+00> : vector<128x128xf32>
    %69 = tpu.matmul %66, %68, %cst_62 {dimension_numbers = #tpu.dot_dimension_numbers<[1], [0], [0], [1], [0, 0, 1, 1], [], []>} : vector<128x72xbf16>, vector<72x128xbf16>, vector<128x128xf32> -> vector<128x128xf32>
    %70 = arith.addf %60, %69 : vector<128x128xf32>
    %c8_i32_63 = arith.constant 8 : i32
    %71 = arith.muli %arg1, %c8_i32_63 : i32
    %c2_i32_64 = arith.constant 2 : i32
    %72 = arith.addi %71, %c2_i32_64 : i32
    %c0_65 = arith.constant 0 : index
    %73 = arith.index_cast %72 : i32 to index
    %c1_66 = arith.constant 1 : index
    %c0_67 = arith.constant 0 : index
    %74 = vector.load %arg2[%c0_65, %73, %c1_66, %c0_67] : memref<1x10x18x72xbf16, #tpu.memory_space<vmem>>, vector<1x8x16x72xbf16>
    %75 = vector.shape_cast %74 : vector<1x8x16x72xbf16> to vector<8x16x72xbf16>
    %76 = vector.shape_cast %75 : vector<8x16x72xbf16> to vector<128x72xbf16>
    %c2_68 = arith.constant 2 : index
    %c1_69 = arith.constant 1 : index
    %c0_70 = arith.constant 0 : index
    %c0_71 = arith.constant 0 : index
    %77 = vector.load %arg3[%c2_68, %c1_69, %c0_70, %c0_71] : memref<3x3x72x128xbf16, #tpu.memory_space<vmem>>, vector<1x1x72x128xbf16>
    %78 = vector.shape_cast %77 : vector<1x1x72x128xbf16> to vector<72x128xbf16>
    %cst_72 = arith.constant dense<0.000000e+00> : vector<128x128xf32>
    %79 = tpu.matmul %76, %78, %cst_72 {dimension_numbers = #tpu.dot_dimension_numbers<[1], [0], [0], [1], [0, 0, 1, 1], [], []>} : vector<128x72xbf16>, vector<72x128xbf16>, vector<128x128xf32> -> vector<128x128xf32>
    %80 = arith.addf %70, %79 : vector<128x128xf32>
    %c8_i32_73 = arith.constant 8 : i32
    %81 = arith.muli %arg1, %c8_i32_73 : i32
    %c2_i32_74 = arith.constant 2 : i32
    %82 = arith.addi %81, %c2_i32_74 : i32
    %c0_75 = arith.constant 0 : index
    %83 = arith.index_cast %82 : i32 to index
    %c2_76 = arith.constant 2 : index
    %c0_77 = arith.constant 0 : index
    %84 = vector.load %arg2[%c0_75, %83, %c2_76, %c0_77] : memref<1x10x18x72xbf16, #tpu.memory_space<vmem>>, vector<1x8x16x72xbf16>
    %85 = vector.shape_cast %84 : vector<1x8x16x72xbf16> to vector<8x16x72xbf16>
    %86 = vector.shape_cast %85 : vector<8x16x72xbf16> to vector<128x72xbf16>
    %c2_78 = arith.constant 2 : index
    %c2_79 = arith.constant 2 : index
    %c0_80 = arith.constant 0 : index
    %c0_81 = arith.constant 0 : index
    %87 = vector.load %arg3[%c2_78, %c2_79, %c0_80, %c0_81] : memref<3x3x72x128xbf16, #tpu.memory_space<vmem>>, vector<1x1x72x128xbf16>
    %88 = vector.shape_cast %87 : vector<1x1x72x128xbf16> to vector<72x128xbf16>
    %cst_82 = arith.constant dense<0.000000e+00> : vector<128x128xf32>
    %89 = tpu.matmul %86, %88, %cst_82 {dimension_numbers = #tpu.dot_dimension_numbers<[1], [0], [0], [1], [0, 0, 1, 1], [], []>} : vector<128x72xbf16>, vector<72x128xbf16>, vector<128x128xf32> -> vector<128x128xf32>
    %90 = arith.addf %80, %89 : vector<128x128xf32>
    %91 = vector.shape_cast %90 : vector<128x128xf32> to vector<8x16x128xf32>
    %92 = arith.truncf %91 : vector<8x16x128xf32> to vector<8x16x128xbf16>
    %c0_83 = arith.constant 0 : index
    %c0_84 = arith.constant 0 : index
    %c0_85 = arith.constant 0 : index
    %c0_86 = arith.constant 0 : index
    %93 = vector.load %arg4[%c0_83, %c0_84, %c0_85, %c0_86] : memref<1x8x16x128xbf16, #tpu.memory_space<vmem>>, vector<1x8x16x128xbf16>
    %94 = vector.shape_cast %93 : vector<1x8x16x128xbf16> to vector<8x16x128xbf16>
    %95 = vector.shape_cast %92 : vector<8x16x128xbf16> to vector<1x8x16x128xbf16>
    tpu.vector_store %arg4[%c0_83, %c0_84, %c0_85, %c0_86], %95 {strides = array<i32>} : memref<1x8x16x128xbf16, #tpu.memory_space<vmem>>, vector<1x8x16x128xbf16>,
    %cst_87 = arith.constant dense<0.000000e+00> : vector<128xf32>
    %96 = vector.multi_reduction <add>, %90, %cst_87 [0] : vector<128x128xf32> to vector<128xf32>
    %97 = vector.shape_cast %96 : vector<128xf32> to vector<1x128xf32>
    %c0_88 = arith.constant 0 : index
    %c0_89 = arith.constant 0 : index
    %c0_90 = arith.constant 0 : index
    %c0_91 = arith.constant 0 : index
    %98 = vector.load %arg5[%c0_88, %c0_89, %c0_90, %c0_91] : memref<1x1x1x128xf32, #tpu.memory_space<vmem>>, vector<1x1x1x128xf32>
    %99 = vector.shape_cast %98 : vector<1x1x1x128xf32> to vector<1x128xf32>
    %100 = vector.shape_cast %97 : vector<1x128xf32> to vector<1x1x1x128xf32>
    tpu.vector_store %arg5[%c0_88, %c0_89, %c0_90, %c0_91], %100 {strides = array<i32>} : memref<1x1x1x128xf32, #tpu.memory_space<vmem>>, vector<1x1x1x128xf32>,
    %101 = arith.mulf %90, %90 : vector<128x128xf32>
    %cst_92 = arith.constant dense<0.000000e+00> : vector<128xf32>
    %102 = vector.multi_reduction <add>, %101, %cst_92 [0] : vector<128x128xf32> to vector<128xf32>
    %103 = vector.shape_cast %102 : vector<128xf32> to vector<1x128xf32>
    %c0_93 = arith.constant 0 : index
    %c0_94 = arith.constant 0 : index
    %c0_95 = arith.constant 0 : index
    %c0_96 = arith.constant 0 : index
    %104 = vector.load %arg6[%c0_93, %c0_94, %c0_95, %c0_96] : memref<1x1x1x128xf32, #tpu.memory_space<vmem>>, vector<1x1x1x128xf32>
    %105 = vector.shape_cast %104 : vector<1x1x1x128xf32> to vector<1x128xf32>
    %106 = vector.shape_cast %103 : vector<1x128xf32> to vector<1x1x1x128xf32>
    tpu.vector_store %arg6[%c0_93, %c0_94, %c0_95, %c0_96], %106 {strides = array<i32>} : memref<1x1x1x128xf32, #tpu.memory_space<vmem>>, vector<1x1x1x128xf32>,
    return
  }
  func.func @transform_0(%arg0: i32, %arg1: i32) -> (i32, i32, i32, i32) {
    %c0_i32 = arith.constant 0 : i32
    %c0_i32_0 = arith.constant 0 : i32
    %c0_i32_1 = arith.constant 0 : i32
    %c0_i32_2 = arith.constant 0 : i32
    return %arg0, %c0_i32, %c0_i32_0, %c0_i32_1 : i32, i32, i32, i32
  }
  func.func @transform_1(%arg0: i32, %arg1: i32) -> (i32, i32, i32, i32) {
    %c0_i32 = arith.constant 0 : i32
    %c0_i32_0 = arith.constant 0 : i32
    %c0_i32_1 = arith.constant 0 : i32
    %c0_i32_2 = arith.constant 0 : i32
    %c0_i32_3 = arith.constant 0 : i32
    return %c0_i32, %c0_i32_0, %c0_i32_1, %c0_i32_2 : i32, i32, i32, i32
  }
  func.func @transform_2(%arg0: i32, %arg1: i32) -> (i32, i32, i32, i32) {
    %c0_i32 = arith.constant 0 : i32
    %c0_i32_0 = arith.constant 0 : i32
    %c0_i32_1 = arith.constant 0 : i32
    return %arg0, %arg1, %c0_i32, %c0_i32_0 : i32, i32, i32, i32
  }
  func.func @transform_3(%arg0: i32, %arg1: i32) -> (i32, i32, i32, i32) {
    %c0_i32 = arith.constant 0 : i32
    %c0_i32_0 = arith.constant 0 : i32
    %c0_i32_1 = arith.constant 0 : i32
    return %arg0, %arg1, %c0_i32, %c0_i32_0 : i32, i32, i32, i32
  }
  func.func @transform_4(%arg0: i32, %arg1: i32) -> (i32, i32, i32, i32) {
    %c0_i32 = arith.constant 0 : i32
    %c0_i32_0 = arith.constant 0 : i32
    %c0_i32_1 = arith.constant 0 : i32
    return %arg0, %arg1, %c0_i32, %c0_i32_0 : i32, i32, i32, i32
  }
}

</mosaic_0001>

<bundles_post_ra>
// kernel: tpu_custom_call.1
= control target key start
LH: loop header
LB: loop body
LE: loop exit
PB: predicated region body
PF: predicated region fallthrough
CT: control target
= control target key end

     0   :  { %10 = vsyncpa [#allocation3], 0  ;;  %s5701_s0 = inlined_call_operand.vmem [shape: bf16[2,10,18,72], index: 0, kind: input, shape index: {}]   ;;  %s5702_s1 = inlined_call_operand.vmem [shape: bf16[3,3,72,128], index: 1, kind: input, shape index: {}]   ;;  %s5703_s2 = inlined_call_operand.hbm [shape: bf16[2,8,16,128], index: 2, kind: output, shape index: {0}]   ;;  %s5704_s3 = inlined_call_operand.hbm [shape: f32[2,1,1,128], index: 3, kind: output, shape index: {1}]   ;;  %s5705_s4 = inlined_call_operand.hbm [shape: f32[2,1,1,128], index: 4, kind: output, shape index: {2}]  }
   0x1   :  { %12 = vsyncpa [#allocation3 + $0x1], 0 }
   0x2   :  { %13 = vsyncpa [#allocation5], 0 }
   0x3   :  { %15 = vsyncpa [#allocation5 + $0x1], 0  ;;  %s4490_s15 = smov 0   ;;  %s4492_s16 = smov 0  }
   0x4   :  { %s4494_s17 = smov 0   ;;  %s4496_s18 = smov 0  }
   0x5   :  { %s4498_s19 = smov 0   ;;  %s4500_s20 = smov 0  }
   0x6 LB: > { %s3343_s21 = sadd.s32 4294967295, %s4458_s20   ;;  %s5706_s22 = sadd.s32 4294967294, %s4458_s20   ;;  %s4458_s20 = sphi %s4500_s20, %s21_s20   ;;  %s4454_s19 = sphi %s4498_s19, %s5752_s19   ;;  %s4450_s18 = sphi %s4496_s18, %s5751_s18   ;;  %s4446_s17 = sphi %s4494_s17, %s5750_s17   ;;  %s4442_s16 = sphi %s4492_s16, %s5749_s16   ;;  %s4438_s15 = sphi %s4490_s15, %s5748_s15  }
   0x7   : > { %s33_s23 = sadd.s32 1, %s4454_s19  ;;  %s89_s24 = sadd.s32 1, %s4446_s17 }
   0x8   : > { %p35_p0 = scmp.ge.s32.totalorder %s33_s23, 2  ;;  %p99_p1 = scmp.ne.s32.totalorder %s4446_s17, %s4442_s16 }
   0x9   : > { %p100_p2 = scmp.eq.s32.totalorder %s3343_s21, 1  ;;  %p105_p3 = scmp.ne.s32.totalorder %s4442_s16, %s4438_s15 }
   0xa   : > { %s5754_s23 = smov (%p35_p0, %s33_s23), 0  ;;  %p106_p5 = scmp.eq.s32.totalorder %s5706_s22, 1 }
   0xb   : > { %p4532_p4 = por %p100_p2, %p99_p1  ;;  %s84_s26 = ssub.s32 %s4454_s19, %s5754_s23 }
   0xc   : > { %p3347_p6 = scmp.ge.s32.totalorder %s4458_s20, 1  ;;  %p87_p7 = scmp.eq.s32.totalorder %s84_s26, 0 }
   0xd   : > { %p4541_p8 = por %p106_p5, %p105_p3  ;;  %p191_p9 = scmp.lt.s32.totalorder %s4458_s20, 3 }
   0xe   : > { %s4547_s28 = scalar_select %p87_p7, %s4446_s17, %s89_s24  }
   0xf   : > { %p192_p10 = pnand %p3347_p6, %p191_p9 }
  0x11   : > { %195 = sbr.rel (%p192_p10) target bundleno = 464 (0x1d0), region = 28 }
  0x16   : > { %v4257_v0 = vld [vmem:[%s5702_s1 + $0x44] ss:$0 sps:$4 sm:$0xff]   ;;  %vm550_vm0 = vcmask 1043456   ;;  %v4259_v1 = vld [vmem:[%s5702_s1 + $0x3c] sm:$0xff]   ;;  %v4261_v6 = vld [vmem:[%s5702_s1 + $0x34] sm:$0xff]   ;;  %p225_p11 = scmp.lt.s32.totalorder %s4450_s18, 1 }
  0x17   : > { %v4258_v2 = vld [vmem:[%s5702_s1 + $0x20] ss:$0 sps:$4 sm:$0xff]   ;;  %4179 = vmatprep.subr.msk.bf16.mxu0 %vm550_vm0, %v4257_v0  ;;  %v552_v3 = vsel %vm550_vm0, %v4257_v0, 0  ;;  %v4260_v4 = vld [vmem:[%s5702_s1 + $0x18] sm:$0xff]   ;;  %v4262_v7 = vld [vmem:[%s5702_s1 + $0x10] sm:$0xff]   ;;  %vm525_vm2 = vcmask 588800  }
  0x18   : > { %4180 = vmatprep.subr.msk.bf16.mxu1 %vm550_vm0, %v4258_v2  ;;  %3936 = vmatpush3.bf16.msra.mxu0 %v552_v3  ;;  %v743_v5 = vsel %vm550_vm0, %v4258_v2, 0  ;;  %s226_s24 = scalar_select %p225_p11, %s4450_s18, 1  ;;  %v4263_v8 = vld [vmem:[%s5702_s1 + $0x2c] sm:$0xff]   ;;  %v4265_v10 = vld [vmem:[%s5702_s1 + $0x24] sm:$0xff]   ;;  %vm269_vm1 = vsmask.f32 3328 }
  0x19   : > { %3962 = vmatpush3.bf16.msra.mxu1 %v743_v5  ;;  %3937 = vmatprep.subr.bf16.mxu0 %v4259_v1  ;;  %v4264_v9 = vld [vmem:[%s5702_s1 + $0x8] sm:$0xff]   ;;  %v4266_v11 = vld [vmem:[%s5702_s1] sm:$0xff]   ;;  %vm270_vm3 = vsmask.f32 7440  ;;  %vm866_vm5 = vcmask 1042432   ;;  %vm867_vm6 = vcmask 1046532  }
  0x1a   : > { %3963 = vmatprep.subr.bf16.mxu1 %v4260_v4  ;;  %s4189_s6 = smul.u32 120, %s226_s24  ;;  %v4269_v33 = vld [vmem:[%s5702_s1 + $0x68] ss:$0 sps:$4 sm:$0xff]   ;;  %vm4619_vm4 = vmor %vm269_vm1, %vm270_vm3  ;;  %v4273_v54 = vld [vmem:[%s5702_s1 + $0x8c] ss:$0 sps:$4 sm:$0xff]   ;;  %s3770_s7 = sshll.u32 %s4450_s18, 10 }
  0x1b   : > { %v1011_v53 = vsel %vm550_vm0, %v4269_v33, 0  ;;  %vm4780_vm7 = vmor %vm866_vm5, %vm867_vm6  ;;  %s5563_s11 = scalar_lea.hbm %s5703_s2, %s3770_s7  ;;  %s4460_s24 = smov [#allocation2]  }
  0x1c   : > { %3938 = vmatpush3.bf16.msra.mxu0 %v4259_v1  ;;  %s4588_s13 = scalar_lea.vmem %s5701_s0, %s4189_s6  ;;  %s4330_s26 = sshll.u32 %s4460_s24, 4  ;;  %s4331_s26 = int_to_ptr.vmem [resolvable:$false] %s4330_s26 }
  0x1d   : > { %3964 = vmatpush3.bf16.msra.mxu1 %v4260_v4  ;;  %3939 = vmatprep.subr.bf16.mxu0 %v4261_v6  ;;  %v236_v12 = vld [vmem:[%s4588_s13] sm:$0xf]  ;;  %v4592_v13 = vld [vmem:[%s4588_s13 + $0x4] sm:$0xf]  ;;  %v4595_v14 = vld [vmem:[%s4588_s13 + $0x8] sm:$0x1] }
  0x1e   : > { %3965 = vmatprep.subr.bf16.mxu1 %v4262_v7  ;;  %v273_v15 = vshrl.u32 %v236_v12, 16  ;;  %v276_v16 = vshll.u32 %v236_v12, 16  ;;  %v282_v17 = vshll.u32 %v4592_v13, 16  ;;  %v286_v18 = vshrl.u32 %v4592_v13, 16  ;;  %v238_v19 = vld [vmem:[%s4588_s13 + $0xc] sm:$0xf] }
  0x1f   : > { %v292_v20 = vshll.u32 %v4595_v14, 16  ;;  %v874_v21 = vrot.slane %v4595_v14, 5  ;;  %v3380_v22 = vcombine.low %v236_v12, %v4592_v13  ;;  %v4604_v23 = vld [vmem:[%s4588_s13 + $0x10] sm:$0xf]  ;;  %v4607_v24 = vld [vmem:[%s4588_s13 + $0x14] sm:$0x1] }
  0x20   : > { %3940 = vmatpush3.bf16.msra.mxu0 %v4261_v6  ;;  %v275_v25 = vrot.slane %v273_v15, 4  ;;  %v278_v26 = vrot.slane %v276_v16, 5  ;;  %v284_v27 = vrot.slane %v282_v17, 5  ;;  %v288_v28 = vrot.slane %v286_v18, 4  ;;  %v240_v38 = vld [vmem:[%s4588_s13 + $0x18] sm:$0xf] }
  0x21   : > { %3966 = vmatpush3.bf16.msra.mxu1 %v4262_v7  ;;  %3941 = vmatprep.subr.bf16.mxu0 %v4263_v8  ;;  %v294_v29 = vrot.slane %v292_v20, 5  ;;  %v297_v30 = vshrl.u32 %v238_v19, 16  ;;  %v300_v31 = vshll.u32 %v238_v19, 16  ;;  %v306_v32 = vshll.u32 %v4604_v23, 16  ;;  %v4625_v44 = vld [vmem:[%s4588_s13 + $0x1c] sm:$0xf] }
  0x22   : > { %3967 = vmatprep.subr.bf16.mxu1 %v4264_v9  ;;  %v279_v34 = vor.u32 %v278_v26, %v275_v25  ;;  %v289_v35 = vor.u32 %v288_v28, %v284_v27  ;;  %3971 = vmatprep.mubr.msk.bf16.mxu1 %vm525_vm2, %v3380_v22  ;;  %v310_v36 = vshrl.u32 %v4604_v23, 16  ;;  %v316_v37 = vshll.u32 %v4607_v24, 16  ;;  %v4628_v49 = vld [vmem:[%s4588_s13 + $0x20] sm:$0x1]  ;;  %v242_v63 = vld [vmem:[%s4588_s13 + $0x24] sm:$0xf] }
  0x23   : > { %v299_v40 = vrot.slane %v297_v30, 4  ;;  %v302_v41 = vrot.slane %v300_v31, 5  ;;  %v308_v42 = vrot.slane %v306_v32, 5  ;;  %v878_v43 = vrot.slane %v4604_v23, 5  ;;  %v4648_v4 = vld [vmem:[%s4588_s13 + $0x28] sm:$0xf] }
  0x24   : > { %3942 = vmatpush3.bf16.msra.mxu0 %v4263_v8  ;;  %v280_v45 = vrot.slane %v279_v34, 4  ;;  %v290_v46 = vrot.slane %v289_v35, 4  ;;  %v312_v47 = vrot.slane %v310_v36, 4  ;;  %v318_v48 = vrot.slane %v316_v37, 5  ;;  %v4271_v15 = vld [vmem:[%s5702_s1 + $0x60] sm:$0xff]   ;;  %v4274_v35 = vld [vmem:[%s5702_s1 + $0x58] sm:$0xff]  }
  0x25   : > { %3968 = vmatpush3.bf16.msra.mxu1 %v4264_v9  ;;  %3943 = vmatprep.subr.bf16.mxu0 %v4265_v10  ;;  %v303_v50 = vor.u32 %v302_v41, %v299_v40  ;;  %v881_v51 = vrot.slane %v4607_v24, 5  ;;  %v3381_v52 = vcombine.low %v238_v19, %v4604_v23  ;;  %v321_v58 = vshrl.u32 %v240_v38, 16  ;;  %v4655_v9 = vld [vmem:[%s4588_s13 + $0x2c] sm:$0x1]  ;;  %v4663_v17 = vld [vmem:[%s4588_s13 + $0x30] sm:$0xf] }
  0x26   : > { %3969 = vmatprep.subr.bf16.mxu1 %v4266_v11  ;;  %v285_v55 = vsel %vm4619_vm4, %v280_v45, %v284_v27  ;;  %v295_v56 = vsel %vm4619_vm4, %v290_v46, %v294_v29  ;;  %v313_v57 = vor.u32 %v312_v47, %v308_v42  ;;  %v324_v61 = vshll.u32 %v240_v38, 16  ;;  %v4668_v25 = vld [vmem:[%s4588_s13 + $0x34] sm:$0xf]  ;;  %v4277_v30 = vld [vmem:[%s5702_s1 + $0x84] sm:$0xff]   ;;  %v4681_v36 = vld [vmem:[%s4588_s13 + $0x38] sm:$0x1] }
  0x27   : > { %v3359_v59 = vcombine.low %v285_v55, %v295_v56  ;;  %v304_v60 = vrot.slane %v303_v50, 4  ;;  %v330_v62 = vshll.u32 %v4625_v44, 16  ;;  %v323_v1 = vrot.slane %v321_v58, 4  ;;  %s4332_s29 = scalar_lea.vmem %s4331_s26, 2048 }
  0x28   : > { %3944 = vmatpush3.bf16.msra.mxu0 %v4265_v10  ;;  %v314_v0 = vrot.slane %v313_v57, 4  ;;  %v334_v2 = vshrl.u32 %v4625_v44, 16  ;;  %v340_v3 = vshll.u32 %v4628_v49, 16  ;;  %v326_v6 = vrot.slane %v324_v61, 5 }
  0x29   : > { %3970 = vmatpush3.bf16.msra.mxu1 %v4266_v11  ;;  %4181 = vmatprep.subr.msk.bf16.mxu0 %vm550_vm0, %v4269_v33  ;;  %v309_v5 = vsel %vm4619_vm4, %v304_v60, %v308_v42  ;;  %v332_v7 = vrot.slane %v330_v62, 5  ;;  %v3382_v8 = vcombine.low %v240_v38, %v4625_v44  ;;  %v345_v16 = vshrl.u32 %v242_v63, 16  ;;  %v4279_v60 = vld [vmem:[%s5702_s1 + $0x7c] sm:$0xff]  }
  0x2a   : > { %4182 = vmatprep.subr.msk.bf16.mxu1 %vm550_vm0, %v4273_v54  ;;  %3945 = vmatprep.mubr.msk.bf16.mxu0 %vm525_vm2, %v3359_v59  ;;  %v319_v10 = vsel %vm4619_vm4, %v314_v0, %v318_v48  ;;  %v336_v11 = vrot.slane %v334_v2, 4  ;;  %v342_v12 = vrot.slane %v340_v3, 5  ;;  %v327_v19 = vor.u32 %v326_v6, %v323_v1  ;;  %v4695_v59 = vld [vmem:[%s4588_s13 + $0x40] sm:$0xf]  ;;  %v4278_v1 = vld [vmem:[%s5702_s1 + $0x50] sm:$0xff]  }
  0x2b   : > { %v3360_v18 = vcombine.low %v309_v5, %v319_v10  ;;  %v348_v20 = vshll.u32 %v242_v63, 16  ;;  %v354_v22 = vshll.u32 %v4648_v4, 16  ;;  %v347_v27 = vrot.slane %v345_v16, 4  ;;  %v4710_v6 = vld [vmem:[%s4588_s13 + $0x44] sm:$0x1]  ;;  %v4282_v10 = vld [vmem:[%s5702_s1 + $0x74] sm:$0xff]  }
  0x2c   : > { %3972 = vmatmul.mubr.msk.bf16.vlgmr.msra.gmra.mxu1 %vm525_vm2, %v3381_v52  ;;  %v337_v26 = vor.u32 %v336_v11, %v332_v7  ;;  %v358_v28 = vshrl.u32 %v4648_v4, 16  ;;  %v364_v29 = vshll.u32 %v4655_v9, 16  ;;  %v328_v31 = vrot.slane %v327_v19, 4 }
  0x2d   : > { %3975 = vmatprep.mubr.msk.bf16.mxu1 %vm525_vm2, %v3382_v8  ;;  %3946 = vmatmul.mubr.msk.bf16.vlgmr.msra.gmra.mxu0 %vm525_vm2, %v3360_v18  ;;  %v350_v32 = vrot.slane %v348_v20, 5  ;;  %v356_v33 = vrot.slane %v354_v22, 5  ;;  %v3383_v34 = vcombine.low %v242_v63, %v4648_v4  ;;  %v1248_v41 = vsel %vm550_vm0, %v4273_v54, 0  ;;  %v246_v54 = vld [vmem:[%s4588_s13 + $0x3c] sm:$0xf] }
  0x2e   : > { %3988 = vmatpush3.bf16.msra.mxu0 %v1011_v53  ;;  %v338_v37 = vrot.slane %v337_v26, 4  ;;  %v360_v38 = vrot.slane %v358_v28, 4  ;;  %v366_v40 = vrot.slane %v364_v29, 5  ;;  %v333_v42 = vsel %vm4619_vm4, %v328_v31, %v332_v7  ;;  %4014 = vmatpush3.bf16.msra.mxu1 %v1248_v41  ;;  %v4713_v8 = vld [vmem:[%s4588_s13 + $0x48] sm:$0xf] }
  0x2f   : > { %3989 = vmatprep.subr.bf16.mxu0 %v4271_v15  ;;  %v351_v45 = vor.u32 %v350_v32, %v347_v27  ;;  %v369_v46 = vshrl.u32 %v4663_v17, 16  ;;  %v372_v47 = vshll.u32 %v4663_v17, 16  ;;  %v378_v52 = vshll.u32 %v4668_v25, 16  ;;  %4015 = vmatprep.subr.bf16.mxu1 %v4277_v30  ;;  %v4721_v18 = vld [vmem:[%s4588_s13 + $0x4c] sm:$0xf] }
  0x30   : > { %v343_v48 = vsel %vm4619_vm4, %v338_v37, %v342_v12  ;;  %v361_v50 = vor.u32 %v360_v38, %v356_v33  ;;  %v382_v53 = vshrl.u32 %v4668_v25, 16  ;;  %v388_v0 = vshll.u32 %v4681_v36, 16  ;;  %v4726_v26 = vld [vmem:[%s4588_s13 + $0x50] sm:$0x1]  ;;  %v4283_v27 = vld [vmem:[%s5702_s1 + $0x48] sm:$0xff]  }
  0x31   : > { %v3361_v55 = vcombine.low %v333_v42, %v343_v48  ;;  %v352_v56 = vrot.slane %v351_v45, 4  ;;  %v371_v57 = vrot.slane %v369_v46, 4  ;;  %v374_v58 = vrot.slane %v372_v47, 5  ;;  %v4734_v32 = vld [vmem:[%s4588_s13 + $0x54] sm:$0xf] }
  0x32   : > { %v362_v61 = vrot.slane %v361_v50, 4  ;;  %3990 = vmatpush3.bf16.msra.mxu0 %v4271_v15  ;;  %v380_v62 = vrot.slane %v378_v52, 5  ;;  %v384_v63 = vrot.slane %v382_v53, 4  ;;  %v3384_v5 = vcombine.low %v4663_v17, %v4668_v25  ;;  %4016 = vmatpush3.bf16.msra.mxu1 %v4277_v30  ;;  %v4744_v45 = vld [vmem:[%s4588_s13 + $0x58] sm:$0xf]  ;;  %v4284_v52 = vld [vmem:[%s5702_s1 + $0x6c] sm:$0xff]  }
  0x33   : > { %3949 = vmatprep.mubr.msk.bf16.mxu0 %vm525_vm2, %v3361_v55  ;;  %v357_v2 = vsel %vm4619_vm4, %v352_v56, %v356_v33  ;;  %3991 = vmatprep.subr.bf16.mxu0 %v4274_v35  ;;  %v375_v3 = vor.u32 %v374_v58, %v371_v57  ;;  %v393_v7 = vshrl.u32 %v246_v54, 16  ;;  %v390_v15 = vrot.slane %v388_v0, 5  ;;  %v4755_v57 = vld [vmem:[%s4588_s13 + $0x5c] sm:$0x1] }
  0x34   : > { %3976 = vmatmul.mubr.msk.bf16.gmra.mxu1 %vm525_vm2, %v3383_v34  ;;  %v367_v11 = vsel %vm4619_vm4, %v362_v61, %v366_v40  ;;  %v385_v12 = vor.u32 %v384_v63, %v380_v62  ;;  %v396_v16 = vshll.u32 %v246_v54, 16  ;;  %v402_v22 = vshll.u32 %v4695_v59, 16  ;;  %4017 = vmatprep.subr.bf16.mxu1 %v4279_v60 }
  0x35   : > { %v3362_v17 = vcombine.low %v357_v2, %v367_v11  ;;  %v376_v19 = vrot.slane %v375_v3, 4  ;;  %3979 = vmatprep.mubr.msk.bf16.mxu1 %vm525_vm2, %v3384_v5  ;;  %v395_v20 = vrot.slane %v393_v7, 4  ;;  %v406_v30 = vshrl.u32 %v4695_v59, 16  ;;  %v842_v3 = vld [vmem:[%s4588_s13] sm:$0xe] }
  0x36   : > { %3992 = vmatpush3.bf16.msra.mxu0 %v4274_v35  ;;  %v386_v28 = vrot.slane %v385_v12, 4  ;;  %v398_v29 = vrot.slane %v396_v16, 5  ;;  %v412_v31 = vshll.u32 %v4710_v6, 16  ;;  %v404_v34 = vrot.slane %v402_v22, 5  ;;  %4018 = vmatpush3.bf16.msra.mxu1 %v4279_v60 }
  0x37   : > { %3950 = vmatmul.mubr.msk.bf16.gmra.mxu0 %vm525_vm2, %v3362_v17  ;;  %v381_v33 = vsel %vm4619_vm4, %v376_v19, %v380_v62  ;;  %v3385_v37 = vcombine.low %v246_v54, %v4695_v59  ;;  %3993 = vmatprep.subr.bf16.mxu0 %v4278_v1  ;;  %v417_v35 = vshrl.u32 %v4713_v8, 16  ;;  %v408_v41 = vrot.slane %v406_v30, 4  ;;  %v4287_v19 = vld [vmem:[%s5702_s1 + $0xb0] ss:$0 sps:$4 sm:$0xff]  }
  0x38   : > { %v391_v38 = vsel %vm4619_vm4, %v386_v28, %v390_v15  ;;  %v399_v40 = vor.u32 %v398_v29, %v395_v20  ;;  %v414_v42 = vrot.slane %v412_v31, 5  ;;  %v420_v48 = vshll.u32 %v4713_v8, 16  ;;  %4019 = vmatprep.subr.bf16.mxu1 %v4282_v10  ;;  %v4285_v30 = vld [vmem:[%s4588_s13 + $0xc] sm:$0xff]  }
  0x39   : > { %v3363_v46 = vcombine.low %v381_v33, %v391_v38  ;;  %v419_v47 = vrot.slane %v417_v35, 4  ;;  %v426_v50 = vshll.u32 %v4721_v18, 16  ;;  %v409_v54 = vor.u32 %v408_v41, %v404_v34 }
  0x3a   : > { %v400_v53 = vrot.slane %v399_v40, 4  ;;  %3994 = vmatpush3.bf16.msra.mxu0 %v4278_v1  ;;  %v430_v55 = vshrl.u32 %v4721_v18, 16  ;;  %v436_v56 = vshll.u32 %v4726_v26, 16  ;;  %v422_v58 = vrot.slane %v420_v48, 5  ;;  %4020 = vmatpush3.bf16.msra.mxu1 %v4282_v10  ;;  %v843_v10 = vld [vmem:[%s4588_s13 + $0xc] sm:$0xe] }
  0x3b   : > { %3953 = vmatprep.mubr.msk.bf16.mxu0 %vm525_vm2, %v3363_v46  ;;  %v428_v60 = vrot.slane %v426_v50, 5  ;;  %v3386_v61 = vcombine.low %v4713_v8, %v4721_v18  ;;  %v441_v62 = vshrl.u32 %v4734_v32, 16  ;;  %3995 = vmatprep.subr.bf16.mxu0 %v4283_v27  ;;  %v410_v0 = vrot.slane %v409_v54, 4  ;;  %v844_v48 = vld [vmem:[%s4588_s13 + $0x18] sm:$0xe] }
  0x3c   : > { %3980 = vmatmul.mubr.msk.bf16.gmra.mxu1 %vm525_vm2, %v3385_v37  ;;  %v405_v63 = vsel %vm4619_vm4, %v400_v53, %v404_v34  ;;  %v432_v1 = vrot.slane %v430_v55, 4  ;;  %v438_v2 = vrot.slane %v436_v56, 5  ;;  %v423_v5 = vor.u32 %v422_v58, %v419_v47  ;;  %4021 = vmatprep.subr.bf16.mxu1 %v4284_v52  ;;  %v4291_v56 = vld [vmem:[%s5702_s1 + $0xd4] ss:$0 sps:$4 sm:$0xff]  }
  0x3d   : > { %3983 = vmatprep.mubr.msk.bf16.mxu1 %vm525_vm2, %v3386_v61  ;;  %v443_v7 = vrot.slane %v441_v62, 4  ;;  %v444_v11 = vshll.u32 %v4734_v32, 16  ;;  %v450_v8 = vshll.u32 %v4744_v45, 16  ;;  %v415_v12 = vsel %vm4619_vm4, %v410_v0, %v414_v42  ;;  %v4286_v62 = vld [vmem:[%s4588_s13 + $0x18] sm:$0xff]   ;;  %v846_v0 = vld [vmem:[%s4588_s13 + $0x30] sm:$0xe] }
  0x3e   : > { %v433_v15 = vor.u32 %v432_v1, %v428_v60  ;;  %v454_v16 = vshrl.u32 %v4744_v45, 16  ;;  %v460_v17 = vshll.u32 %v4755_v57, 16  ;;  %3996 = vmatpush3.bf16.msra.mxu0 %v4283_v27  ;;  %v3364_v20 = vcombine.low %v405_v63, %v415_v12  ;;  %4022 = vmatpush3.bf16.msra.mxu1 %v4284_v52 }
  0x3f   : > { %v424_v22 = vrot.slane %v423_v5, 4  ;;  %v446_v28 = vrot.slane %v444_v11, 5  ;;  %v452_v29 = vrot.slane %v450_v8, 5  ;;  %v3387_v37 = vcombine.low %v4734_v32, %v4744_v45  ;;  %4183 = vmatprep.subr.msk.bf16.mxu0 %vm550_vm0, %v4287_v19  ;;  %4184 = vmatprep.subr.msk.bf16.mxu1 %vm550_vm0, %v4291_v56  ;;  %v4288_v5 = vld [vmem:[%s4588_s13 + $0x24] sm:$0xff]   ;;  %v847_v11 = vld [vmem:[%s4588_s13 + $0x3c] sm:$0xe] }
  0x40   : > { %v434_v31 = vrot.slane %v433_v15, 4  ;;  %v456_v33 = vrot.slane %v454_v16, 4  ;;  %v462_v34 = vrot.slane %v460_v17, 5  ;;  %3954 = vmatmul.mubr.msk.bf16.gmra.mxu0 %vm525_vm2, %v3364_v20  ;;  %v3401_v40 = vrot.slane %v842_v3, 9  ;;  %v4297_v20 = vld [vmem:[%s5702_s1 + $0xc4] sm:$0xff]  }
  0x41   : > { %v429_v35 = vsel %vm4619_vm4, %v424_v22, %v428_v60  ;;  %v447_v38 = vor.u32 %v446_v28, %v443_v7  ;;  %v871_v41 = vrot.slane %v4592_v13, 5  ;;  %v3402_v46 = vrot.slane %v843_v10, 9  ;;  %v845_v13 = vld [vmem:[%s4588_s13 + $0x24] sm:$0xe] }
  0x42   : > { %v439_v32 = vsel %vm4619_vm4, %v434_v31, %v438_v2  ;;  %v457_v42 = vor.u32 %v456_v33, %v452_v29  ;;  %v880_v47 = vrot.slane %v878_v43, 4  ;;  %v3403_v63 = vrot.slane %v844_v48, 9  ;;  %v4290_v33 = vld [vmem:[%s4588_s13 + $0x30] sm:$0xff]  }
  0x43   : > { %v3365_v50 = vcombine.low %v429_v35, %v439_v32  ;;  %v448_v52 = vrot.slane %v447_v38, 4  ;;  %v872_v53 = vsel %vm4780_vm7, %v3401_v40, %v871_v41  ;;  %v873_v54 = vrot.slane %v871_v41, 4  ;;  %v4293_v38 = vld [vmem:[%s4588_s13 + $0x3c] sm:$0xff]  }
  0x44   : > { %3984 = vmatmul.mubr.msk.bf16.gmra.mxu1 %vm525_vm2, %v3387_v37  ;;  %v458_v55 = vrot.slane %v457_v42, 4  ;;  %v4813_v61 = vsel %vm4780_vm7, %v3402_v46, %v878_v43  ;;  %v885_v3 = vrot.slane %v4625_v44, 5  ;;  %v888_v14 = vrot.slane %v4628_v49, 5  ;;  %v4295_v44 = vld [vmem:[%s5702_s1 + $0xcc] sm:$0xff]  }
  0x45   : > { %4023 = vmatprep.mubr.msk.bf16.mxu1 %vm525_vm2, %v4285_v30  ;;  %3957 = vmatprep.mubr.msk.bf16.mxu0 %vm525_vm2, %v3365_v50  ;;  %v453_v58 = vsel %vm4619_vm4, %v448_v52, %v452_v29  ;;  %v875_v60 = vsel %vm4780_vm7, %v873_v54, %v874_v21  ;;  %v882_v23 = vsel %vm4780_vm7, %v880_v47, %v881_v51  ;;  %v1665_v43 = vsel %vm550_vm0, %v4287_v19, 0 }
  0x46   : > { %v463_v1 = vsel %vm4619_vm4, %v458_v55, %v462_v34  ;;  %v3418_v2 = vcombine.low %v872_v53, %v875_v60  ;;  %v892_v7 = vrot.slane %v4648_v4, 5  ;;  %v887_v8 = vrot.slane %v885_v3, 4  ;;  %v848_v34 = vld [vmem:[%s4588_s13 + $0x48] sm:$0xe]  ;;  %v4300_v53 = vld [vmem:[%s5702_s1 + $0xbc] sm:$0xff]  }
  0x47   : > { %v3366_v21 = vcombine.low %v453_v58, %v463_v1  ;;  %v3404_v49 = vrot.slane %v845_v13, 9  ;;  %v895_v12 = vrot.slane %v4655_v9, 5  ;;  %v1954_v15 = vsel %vm550_vm0, %v4291_v56, 0  ;;  %v4292_v13 = vld [vmem:[%s5702_s1 + $0xa0] sm:$0xff]   ;;  %v3487_v1 = vld [vmem:[%s4588_s13 + $0x14] sm:$0x1] }
  0x48   : > { %v886_v24 = vsel %vm4780_vm7, %v3403_v63, %v885_v3  ;;  %v894_v51 = vrot.slane %v892_v7, 4  ;;  %v3405_v16 = vrot.slane %v846_v0, 9  ;;  %v899_v4 = vrot.slane %v4668_v25, 5  ;;  %v3485_v63 = vld [vmem:[%s4588_s13 + $0xc] sm:$0xf] }
  0x49   : > { %3958 = vmatmul.mubr.msk.bf16.gmra.mxu0 %vm525_vm2, %v3366_v21  ;;  %v889_v17 = vsel %vm4780_vm7, %v887_v8, %v888_v14  ;;  %v902_v9 = vrot.slane %v4681_v36, 5  ;;  %v3406_v10 = vrot.slane %v847_v11, 9  ;;  %v906_v19 = vrot.slane %v4695_v59, 5  ;;  %v4289_v59 = vld [vmem:[%s5702_s1 + $0xa8] sm:$0xff]   ;;  %v3486_v0 = vld [vmem:[%s4588_s13 + $0x10] sm:$0xf] }
  0x4a   : > { %3997 = vmatprep.mubr.msk.bf16.mxu0 %vm525_vm2, %v3418_v2  ;;  %v901_v25 = vrot.slane %v899_v4, 4  ;;  %v909_v22 = vrot.slane %v4710_v6, 5  ;;  %v3419_v28 = vcombine.low %v4813_v61, %v882_v23  ;;  %v913_v36 = vrot.slane %v4721_v18, 5  ;;  %v3539_v23 = vld [vmem:[%s4588_s13 + $0xc] sm:$0xe] }
  0x4b   : > { %v908_v29 = vrot.slane %v906_v19, 4  ;;  %v3420_v30 = vcombine.low %v886_v24, %v889_v17  ;;  %v4857_v31 = vsel %vm4780_vm7, %v3404_v49, %v892_v7  ;;  %v916_v6 = vrot.slane %v4726_v26, 5  ;;  %v3488_v49 = vld [vmem:[%s4588_s13 + $0x18] sm:$0xf] }
  0x4c   : > { %4024 = vmatmul.mubr.msk.bf16.vlgmr.msra.gmra.mxu1 %vm525_vm2, %v4286_v62  ;;  %v920_v37 = vrot.slane %v4744_v45, 5  ;;  %v4865_v35 = vsel %vm4780_vm7, %v894_v51, %v895_v12  ;;  %v4869_v18 = vsel %vm4780_vm7, %v3405_v16, %v899_v4  ;;  %v3407_v40 = vrot.slane %v848_v34, 9  ;;  %v849_v45 = vld [vmem:[%s4588_s13 + $0x54] sm:$0xe]  ;;  %v3489_v16 = vld [vmem:[%s4588_s13 + $0x1c] sm:$0xf] }
  0x4d   : > { %4027 = vmatprep.mubr.msk.bf16.mxu1 %vm525_vm2, %v4288_v5  ;;  %4066 = vmatpush3.bf16.msra.mxu1 %v1954_v15  ;;  %v915_v41 = vrot.slane %v913_v36, 4  ;;  %v4874_v32 = vsel %vm4780_vm7, %v901_v25, %v902_v9  ;;  %v4878_v26 = vsel %vm4780_vm7, %v3406_v10, %v906_v19  ;;  %v923_v46 = vrot.slane %v4755_v57, 5  ;;  %v4302_v62 = vld [vmem:[%s5702_s1 + $0xb4] sm:$0xff]   ;;  %v3490_v19 = vld [vmem:[%s4588_s13 + $0x20] sm:$0x1] }
  0x4e   : > { %4067 = vmatprep.subr.bf16.mxu1 %v4295_v44  ;;  %v922_v42 = vrot.slane %v920_v37, 4  ;;  %v4884_v47 = vsel %vm4780_vm7, %v908_v29, %v909_v22  ;;  %v4888_v48 = vsel %vm4780_vm7, %v3407_v40, %v913_v36  ;;  %v3408_v52 = vrot.slane %v849_v45, 9  ;;  %v4296_v5 = vld [vmem:[%s5702_s1 + $0x98] sm:$0xff]  }
  0x4f   : > { %v4892_v50 = vsel %vm4780_vm7, %v915_v41, %v916_v6  ;;  %v3421_v54 = vcombine.low %v4857_v31, %v4865_v35  ;;  %v3422_v55 = vcombine.low %v4869_v18, %v4874_v32  ;;  %v3423_v58 = vcombine.low %v4878_v26, %v4884_v47  ;;  %v4298_v4 = vld [vmem:[%s4588_s13 + $0x54] sm:$0xff]  }
  0x50   : > { %v4900_v57 = vsel %vm4780_vm7, %v922_v42, %v923_v46  ;;  %v4912_v56 = vsel %vm4780_vm7, %v3408_v52, %v920_v37  ;;  %v3424_v60 = vcombine.low %v4888_v48, %v4892_v50  ;;  %v1388_v2 = vshrl.u32 %v3485_v63, 16  ;;  %v3540_v36 = vld [vmem:[%s4588_s13 + $0x18] sm:$0xe]  ;;  %v4303_v34 = vld [vmem:[%s5702_s1 + $0xf8] ss:$0 sps:$4 sm:$0xff]   ;;  %v4301_v6 = vld [vmem:[%s5702_s1 + $0x90] sm:$0xff]  }
  0x51   : > { %4068 = vmatpush3.bf16.msra.mxu1 %v4295_v44  ;;  %3998 = vmatmul.mubr.msk.bf16.vlgmr.msra.gmra.mxu0 %vm525_vm2, %v3419_v28  ;;  %v3425_v61 = vcombine.low %v4912_v56, %v4900_v57  ;;  %v1391_v3 = vshll.u32 %v3485_v63, 16  ;;  %v1397_v14 = vshll.u32 %v3486_v0, 16  ;;  %v1401_v21 = vshrl.u32 %v3486_v0, 16  ;;  %v3491_v42 = vld [vmem:[%s4588_s13 + $0x24] sm:$0xf] }
  0x52   : > { %4069 = vmatprep.subr.bf16.mxu1 %v4297_v20  ;;  %4040 = vmatpush3.bf16.msra.mxu0 %v1665_v43  ;;  %v4294_v43 = vld [vmem:[%s4588_s13 + $0x48] sm:$0xff]   ;;  %v1407_v7 = vshll.u32 %v3487_v1, 16  ;;  %v3547_v11 = vrot.slane %v3539_v23, 9  ;;  %v1814_v44 = vrot.slane %v3486_v0, 5  ;;  %v1817_v8 = vrot.slane %v3487_v1, 5 }
  0x53   : > { %4001 = vmatprep.mubr.msk.bf16.mxu0 %vm525_vm2, %v3420_v30  ;;  %4041 = vmatprep.subr.bf16.mxu0 %v4289_v59  ;;  %v1390_v12 = vrot.slane %v1388_v2, 4  ;;  %v1393_v15 = vrot.slane %v1391_v3, 5  ;;  %v1399_v24 = vrot.slane %v1397_v14, 5  ;;  %v1403_v51 = vrot.slane %v1401_v21, 4  ;;  %v3500_v56 = vld [vmem:[%s4588_s13 + $0x48] sm:$0xf] }
  0x54   : > { %4028 = vmatmul.mubr.msk.bf16.gmra.mxu1 %vm525_vm2, %v4290_v33  ;;  %v1409_v17 = vrot.slane %v1407_v7, 5  ;;  %v4938_v9 = vsel %vm4780_vm7, %v3547_v11, %v1814_v44  ;;  %v1816_v10 = vrot.slane %v1814_v44, 4  ;;  %v1415_v28 = vshll.u32 %v3488_v49, 16 }
  0x55   : > { %4031 = vmatprep.mubr.msk.bf16.mxu1 %vm525_vm2, %v4293_v38  ;;  %4070 = vmatpush3.bf16.msra.mxu1 %v4297_v20  ;;  %v1412_v20 = vshrl.u32 %v3488_v49, 16  ;;  %v1394_v25 = vor.u32 %v1393_v15, %v1390_v12  ;;  %v1404_v22 = vor.u32 %v1403_v51, %v1399_v24  ;;  %v1421_v29 = vshll.u32 %v3489_v16, 16  ;;  %v3495_v51 = vld [vmem:[%s4588_s13 + $0x34] sm:$0xf] }
  0x56   : > { %4071 = vmatprep.subr.bf16.mxu1 %v4300_v53  ;;  %4042 = vmatpush3.bf16.msra.mxu0 %v4289_v59  ;;  %v4945_v30 = vsel %vm4780_vm7, %v1816_v10, %v1817_v8  ;;  %v1425_v31 = vshrl.u32 %v3489_v16, 16  ;;  %v1431_v33 = vshll.u32 %v3490_v19, 16  ;;  %v1417_v38 = vrot.slane %v1415_v28, 5  ;;  %v3541_v8 = vld [vmem:[%s4588_s13 + $0x24] sm:$0xe] }
  0x57   : > { %4043 = vmatprep.subr.bf16.mxu0 %v4292_v13  ;;  %v1414_v59 = vrot.slane %v1412_v20, 4  ;;  %v1395_v37 = vrot.slane %v1394_v25, 4  ;;  %v1405_v35 = vrot.slane %v1404_v22, 4  ;;  %v3564_v18 = vcombine.low %v4938_v9, %v4945_v30  ;;  %v4305_v10 = vld [vmem:[%s5702_s1 + $0x11c] ss:$0 sps:$4 sm:$0xff]  }
  0x58   : > { %v1423_v40 = vrot.slane %v1421_v29, 5  ;;  %v1427_v41 = vrot.slane %v1425_v31, 4  ;;  %v1433_v32 = vrot.slane %v1431_v33, 5  ;;  %v3548_v45 = vrot.slane %v3540_v36, 9  ;;  %v3496_v20 = vld [vmem:[%s4588_s13 + $0x38] sm:$0x1] }
  0x59   : > { %4072 = vmatpush3.bf16.msra.mxu1 %v4300_v53  ;;  %4002 = vmatmul.mubr.msk.bf16.gmra.mxu0 %vm525_vm2, %v3421_v54  ;;  %v1400_v46 = vsel %vm4619_vm4, %v1395_v37, %v1399_v24  ;;  %v1410_v52 = vsel %vm4619_vm4, %v1405_v35, %v1409_v17  ;;  %v1418_v53 = vor.u32 %v1417_v38, %v1414_v59  ;;  %v1821_v54 = vrot.slane %v3489_v16, 5  ;;  %v3494_v24 = vld [vmem:[%s4588_s13 + $0x30] sm:$0xf] }
  0x5a   : > { %4073 = vmatprep.subr.bf16.mxu1 %v4302_v62  ;;  %4044 = vmatpush3.bf16.msra.mxu0 %v4292_v13  ;;  %v3492_v13 = vld [vmem:[%s4588_s13 + $0x28] sm:$0xf]  ;;  %v4965_v63 = vcombine.low %v1400_v46, %v1410_v52  ;;  %v1428_v0 = vor.u32 %v1427_v41, %v1423_v40  ;;  %v1824_v1 = vrot.slane %v3490_v19, 5  ;;  %v4968_v2 = vsel %vm550_vm0, %v4303_v34, 0  ;;  %v3542_v30 = vld [vmem:[%s4588_s13 + $0x30] sm:$0xe] }
  0x5b   : > { %4005 = vmatprep.mubr.msk.bf16.mxu0 %vm525_vm2, %v3422_v55  ;;  %4045 = vmatprep.subr.bf16.mxu0 %v4296_v5  ;;  %v3493_v55 = vld [vmem:[%s4588_s13 + $0x2c] sm:$0x1]  ;;  %v1419_v3 = vrot.slane %v1418_v53, 4  ;;  %v4973_v14 = vsel %vm4780_vm7, %v3548_v45, %v1821_v54  ;;  %v1823_v21 = vrot.slane %v1821_v54, 4  ;;  %v1436_v23 = vshrl.u32 %v3491_v42, 16 }
  0x5c   : > { %4032 = vmatmul.mubr.msk.bf16.gmra.mxu1 %vm525_vm2, %v4294_v43  ;;  %v1429_v43 = vrot.slane %v1428_v0, 4  ;;  %v1439_v7 = vshll.u32 %v3491_v42, 16  ;;  %v1445_v11 = vshll.u32 %v3492_v13, 16  ;;  %v1449_v44 = vshrl.u32 %v3492_v13, 16  ;;  %v3497_v45 = vld [vmem:[%s4588_s13 + $0x3c] sm:$0xf] }
  0x5d   : > { %4035 = vmatprep.mubr.msk.bf16.mxu1 %vm525_vm2, %v4298_v4  ;;  %4074 = vmatpush3.bf16.msra.mxu1 %v4302_v62  ;;  %v4299_v62 = vld [vmem:[%s4588_s13 + $0x60] sm:$0xff]   ;;  %v1424_v49 = vsel %vm4619_vm4, %v1419_v3, %v1423_v40  ;;  %v1438_v12 = vrot.slane %v1436_v23, 4  ;;  %v1455_v15 = vshll.u32 %v3493_v55, 16  ;;  %v3549_v19 = vrot.slane %v3541_v8, 9  ;;  %v3543_v3 = vld [vmem:[%s4588_s13 + $0x3c] sm:$0xe] }
  0x5e   : > { %4046 = vmatpush3.bf16.msra.mxu0 %v4296_v5  ;;  %v4980_v5 = vsel %vm4780_vm7, %v1823_v21, %v1824_v1  ;;  %v1434_v16 = vsel %vm4619_vm4, %v1429_v43, %v1433_v32  ;;  %v1441_v17 = vrot.slane %v1439_v7, 5  ;;  %v1447_v9 = vrot.slane %v1445_v11, 5  ;;  %4186 = vmatprep.subr.msk.bf16.mxu1 %vm550_vm0, %v4305_v10  ;;  %v3498_v54 = vld [vmem:[%s4588_s13 + $0x40] sm:$0xf]  ;;  %v4309_v8 = vld [vmem:[%s5702_s1 + $0x10c] sm:$0xff]  }
  0x5f   : > { %4047 = vmatprep.subr.bf16.mxu0 %v4301_v6  ;;  %v3565_v4 = vcombine.low %v4973_v14, %v4980_v5  ;;  %v4999_v26 = vcombine.low %v1424_v49, %v1434_v16  ;;  %v1451_v47 = vrot.slane %v1449_v44, 4  ;;  %v1828_v22 = vrot.slane %v3492_v13, 5  ;;  %v4307_v14 = vld [vmem:[%s5702_s1 + $0x114] sm:$0xff]  }
  0x60   : > { %v1442_v25 = vor.u32 %v1441_v17, %v1438_v12  ;;  %v1831_v28 = vrot.slane %v3493_v55, 5  ;;  %v1460_v29 = vshrl.u32 %v3494_v24, 16  ;;  %v1463_v50 = vshll.u32 %v3494_v24, 16 }
  0x61   : > { %4006 = vmatmul.mubr.msk.bf16.gmra.mxu0 %vm525_vm2, %v3423_v58  ;;  %v1457_v58 = vrot.slane %v1455_v15, 5  ;;  %v1452_v48 = vor.u32 %v1451_v47, %v1447_v9  ;;  %v1473_v36 = vshrl.u32 %v3495_v51, 16  ;;  %v1829_v31 = vsel %vm4780_vm7, %v3549_v19, %v1828_v22 }
  0x62   : > { %4009 = vmatprep.mubr.msk.bf16.mxu0 %vm525_vm2, %v3424_v60  ;;  %4048 = vmatpush3.bf16.msra.mxu0 %v4301_v6  ;;  %v1469_v60 = vshll.u32 %v3495_v51, 16  ;;  %v1443_v59 = vrot.slane %v1442_v25, 4  ;;  %v1830_v33 = vrot.slane %v1828_v22, 4  ;;  %v1465_v37 = vrot.slane %v1463_v50, 5  ;;  %v5050_v22 = vld [vmem:[%s4588_s13 + $0x50] sm:$0x1] }
  0x63   : > { %4185 = vmatprep.subr.msk.bf16.mxu0 %vm550_vm0, %v4303_v34  ;;  %v1462_v34 = vrot.slane %v1460_v29, 4  ;;  %v1453_v6 = vrot.slane %v1452_v48, 4  ;;  %v1475_v38 = vrot.slane %v1473_v36, 4  ;;  %v1479_v41 = vshll.u32 %v3496_v20, 16  ;;  %v3544_v36 = vld [vmem:[%s4588_s13 + $0x48] sm:$0xe] }
  0x64   : > { %4036 = vmatmul.mubr.msk.bf16.gmra.mxu1 %vm525_vm2, %v4299_v62  ;;  %v1471_v35 = vrot.slane %v1469_v60, 5  ;;  %v1832_v40 = vsel %vm4780_vm7, %v1830_v33, %v1831_v28  ;;  %v3550_v32 = vrot.slane %v3542_v30, 9  ;;  %v1835_v0 = vrot.slane %v3495_v51, 5  ;;  %v3499_v62 = vld [vmem:[%s4588_s13 + $0x44] sm:$0x1] }
  0x65   : > { %4075 = vmatprep.mubr.msk.bf16.mxu1 %vm525_vm2, %v3564_v18  ;;  %v1448_v18 = vsel %vm4619_vm4, %v1443_v59, %v1447_v9  ;;  %v1458_v42 = vsel %vm4619_vm4, %v1453_v6, %v1457_v58  ;;  %v3566_v46 = vcombine.low %v1829_v31, %v1832_v40  ;;  %v1466_v52 = vor.u32 %v1465_v37, %v1462_v34  ;;  %v4304_v58 = vld [vmem:[%s5702_s1 + $0xf0] sm:$0xff]   ;;  %v4310_v34 = vld [vmem:[%s5702_s1 + $0x104] sm:$0xff]  }
  0x66   : > { %v1476_v53 = vor.u32 %v1475_v38, %v1471_v35  ;;  %v3520_v13 = vcombine.low %v1448_v18, %v1458_v42  ;;  %v1481_v55 = vrot.slane %v1479_v41, 5  ;;  %v1838_v1 = vrot.slane %v3496_v20, 5 }
  0x67   : > { %v1467_v21 = vrot.slane %v1466_v52, 4  ;;  %v2608_v43 = vsel %vm550_vm0, %v4305_v10, 0  ;;  %v1484_v57 = vshrl.u32 %v3497_v45, 16  ;;  %v1837_v7 = vrot.slane %v1835_v0, 4 }
  0x68   : > { %v1477_v23 = vrot.slane %v1476_v53, 4  ;;  %v1487_v11 = vshll.u32 %v3497_v45, 16  ;;  %v1493_v44 = vshll.u32 %v3498_v54, 16  ;;  %v1497_v12 = vshrl.u32 %v3498_v54, 16  ;;  %v3504_v45 = vld [vmem:[%s4588_s13 + $0x58] sm:$0xf] }
  0x69   : > { %4010 = vmatmul.mubr.msk.bf16.gmra.mxu0 %vm525_vm2, %v3425_v61  ;;  %v1836_v61 = vsel %vm4780_vm7, %v3550_v32, %v1835_v0  ;;  %v1486_v5 = vrot.slane %v1484_v57, 4  ;;  %v1839_v24 = vsel %vm4780_vm7, %v1837_v7, %v1838_v1  ;;  %v1503_v10 = vshll.u32 %v3499_v62, 16  ;;  %v3503_v32 = vld [vmem:[%s4588_s13 + $0x54] sm:$0xf] }
  0x6a   : > { %4049 = vmatprep.mubr.msk.bf16.mxu0 %vm525_vm2, %v4965_v63  ;;  %v1472_v63 = vsel %vm4619_vm4, %v1467_v21, %v1471_v35  ;;  %v1482_v49 = vsel %vm4619_vm4, %v1477_v23, %v1481_v55  ;;  %v1489_v51 = vrot.slane %v1487_v11, 5  ;;  %v1495_v16 = vrot.slane %v1493_v44, 5  ;;  %v3506_v44 = vld [vmem:[%s4588_s13 + $0x60] sm:$0xf] }
  0x6b   : > { %v5041_v15 = vcombine.low %v1472_v63, %v1482_v49  ;;  %v3567_v17 = vcombine.low %v1836_v61, %v1839_v24  ;;  %v1499_v9 = vrot.slane %v1497_v12, 4  ;;  %v3551_v47 = vrot.slane %v3543_v3, 9  ;;  %v4312_v3 = vld [vmem:[%s5702_s1 + $0xfc] sm:$0xff]  }
  0x6c   : > { %4076 = vmatmul.mubr.msk.bf16.vlgmr.msra.gmra.mxu1 %vm525_vm2, %v3565_v4  ;;  %v3501_v4 = vld [vmem:[%s4588_s13 + $0x4c] sm:$0xf]  ;;  %v1490_v19 = vor.u32 %v1489_v51, %v1486_v5  ;;  %v1842_v20 = vrot.slane %v3498_v54, 5  ;;  %v1845_v25 = vrot.slane %v3499_v62, 5  ;;  %v1508_v28 = vshrl.u32 %v3500_v56, 16  ;;  %v4308_v61 = vld [vmem:[%s5702_s1 + $0xe0] sm:$0xff]  }
  0x6d   : > { %4079 = vmatprep.mubr.msk.bf16.mxu1 %vm525_vm2, %v3566_v46  ;;  %4118 = vmatpush3.bf16.msra.mxu1 %v2608_v43  ;;  %v1500_v29 = vor.u32 %v1499_v9, %v1495_v16  ;;  %v1505_v48 = vrot.slane %v1503_v10, 5  ;;  %v1511_v50 = vshll.u32 %v3500_v56, 16  ;;  %v1517_v60 = vshll.u32 %v3501_v4, 16  ;;  %v5076_v54 = vld [vmem:[%s4588_s13 + $0x5c] sm:$0x1] }
  0x6e   : > { %4119 = vmatprep.subr.bf16.mxu1 %v4307_v14  ;;  %v1491_v30 = vrot.slane %v1490_v19, 4  ;;  %v1843_v59 = vsel %vm4780_vm7, %v3551_v47, %v1842_v20  ;;  %v1844_v31 = vrot.slane %v1842_v20, 4  ;;  %v1510_v33 = vrot.slane %v1508_v28, 4  ;;  %v3545_v62 = vld [vmem:[%s4588_s13 + $0x54] sm:$0xe] }
  0x6f   : > { %v1501_v6 = vrot.slane %v1500_v29, 4  ;;  %v1513_v37 = vrot.slane %v1511_v50, 5  ;;  %v1519_v35 = vrot.slane %v1517_v60, 5  ;;  %v1521_v38 = vshrl.u32 %v3501_v4, 16  ;;  %v3507_v47 = vld [vmem:[%s4588_s13 + $0x64] sm:$0xf] }
  0x70   : > { %v1496_v18 = vsel %vm4619_vm4, %v1491_v30, %v1495_v16  ;;  %v1527_v40 = vshll.u32 %v5050_v22, 16  ;;  %v3552_v41 = vrot.slane %v3544_v36, 9  ;;  %v1849_v0 = vrot.slane %v3501_v4, 5 }
  0x71   : > { %4120 = vmatpush3.bf16.msra.mxu1 %v4307_v14  ;;  %4050 = vmatmul.mubr.msk.bf16.vlgmr.msra.gmra.mxu0 %vm525_vm2, %v4999_v26  ;;  %v4306_v26 = vld [vmem:[%s5702_s1 + $0xe8] sm:$0xff]   ;;  %v1506_v42 = vsel %vm4619_vm4, %v1501_v6, %v1505_v48  ;;  %v1514_v52 = vor.u32 %v1513_v37, %v1510_v33  ;;  %v1523_v53 = vrot.slane %v1521_v38, 4  ;;  %v1852_v1 = vrot.slane %v5050_v22, 5  ;;  %v4311_v22 = vld [vmem:[%s5702_s1 + $0xd8] sm:$0xff]   ;;  %v3546_v6 = vld [vmem:[%s4588_s13 + $0x60] sm:$0xe] }
  0x72   : > { %4121 = vmatprep.subr.bf16.mxu1 %v4309_v8  ;;  %4092 = vmatpush3.bf16.msra.mxu0 %v4968_v2  ;;  %v1846_v2 = vsel %vm4780_vm7, %v1844_v31, %v1845_v25  ;;  %v1529_v55 = vrot.slane %v1527_v40, 5  ;;  %v1532_v23 = vshrl.u32 %v3503_v32, 16  ;;  %v1535_v43 = vshll.u32 %v3503_v32, 16  ;;  %v3508_v25 = vld [vmem:[%s4588_s13 + $0x68] sm:$0x1] }
  0x73   : > { %4053 = vmatprep.mubr.msk.bf16.mxu0 %vm525_vm2, %v3520_v13  ;;  %4093 = vmatprep.subr.bf16.mxu0 %v4304_v58  ;;  %v3568_v46 = vcombine.low %v1843_v59, %v1846_v2  ;;  %v3522_v13 = vcombine.low %v1496_v18, %v1506_v42  ;;  %v1515_v14 = vrot.slane %v1514_v52, 4  ;;  %v1524_v21 = vor.u32 %v1523_v53, %v1519_v35  ;;  %v3631_v2 = vld [vmem:[%s4588_s13 + $0x18] sm:$0xf]  ;;  %v5118_v40 = vld [vmem:[%s4588_s13 + $0x1c] sm:$0xf] }
  0x74   : > { %4080 = vmatmul.mubr.msk.bf16.gmra.mxu1 %vm525_vm2, %v3567_v17  ;;  %v1850_v57 = vsel %vm4780_vm7, %v3552_v41, %v1849_v0  ;;  %v1851_v56 = vrot.slane %v1849_v0, 4  ;;  %v1541_v7 = vshll.u32 %v3504_v45, 16  ;;  %v1545_v11 = vshrl.u32 %v3504_v45, 16  ;;  %v4315_v52 = vld [vmem:[%s5702_s1 + $0x140] ss:$0 sps:$4 sm:$0xff]  }
  0x75   : > { %4122 = vmatpush3.bf16.msra.mxu1 %v4309_v8  ;;  %4083 = vmatprep.mubr.msk.bf16.mxu1 %vm525_vm2, %v3568_v46  ;;  %v1520_v8 = vsel %vm4619_vm4, %v1515_v14, %v1519_v35  ;;  %v1525_v63 = vrot.slane %v1524_v21, 4  ;;  %v1534_v49 = vrot.slane %v1532_v23, 4  ;;  %v1537_v5 = vrot.slane %v1535_v43, 5  ;;  %v5121_v46 = vld [vmem:[%s4588_s13 + $0x20] sm:$0x1] }
  0x76   : > { %4123 = vmatprep.subr.bf16.mxu1 %v4310_v34  ;;  %4094 = vmatpush3.bf16.msra.mxu0 %v4304_v58  ;;  %v1853_v12 = vsel %vm4780_vm7, %v1851_v56, %v1852_v1  ;;  %v1543_v24 = vrot.slane %v1541_v7, 5  ;;  %v1547_v51 = vrot.slane %v1545_v11, 4  ;;  %v1551_v16 = vshll.u32 %v5076_v54, 16  ;;  %v3634_v0 = vld [vmem:[%s4588_s13 + $0x24] sm:$0xf] }
  0x77   : > { %4095 = vmatprep.subr.bf16.mxu0 %v4306_v26  ;;  %v1530_v4 = vsel %vm4619_vm4, %v1525_v63, %v1529_v55  ;;  %v3569_v17 = vcombine.low %v1850_v57, %v1853_v12  ;;  %v1538_v9 = vor.u32 %v1537_v5, %v1534_v49  ;;  %v3553_v10 = vrot.slane %v3545_v62, 9  ;;  %v5135_v56 = vld [vmem:[%s4588_s13 + $0x28] sm:$0xf] }
  0x78   : > { %v1548_v58 = vor.u32 %v1547_v51, %v1543_v24  ;;  %v1553_v19 = vrot.slane %v1551_v16, 5  ;;  %v1856_v20 = vrot.slane %v3504_v45, 5  ;;  %v1859_v29 = vrot.slane %v5076_v54, 5 }
  0x79   : > { %4124 = vmatpush3.bf16.msra.mxu1 %v4310_v34  ;;  %4054 = vmatmul.mubr.msk.bf16.gmra.mxu0 %vm525_vm2, %v5041_v15  ;;  %v3523_v15 = vcombine.low %v1520_v8, %v1530_v4  ;;  %v1539_v28 = vrot.slane %v1538_v9, 4  ;;  %v1556_v48 = vshrl.u32 %v3506_v44, 16  ;;  %v1559_v50 = vshll.u32 %v3506_v44, 16  ;;  %v5141_v8 = vld [vmem:[%s4588_s13 + $0x2c] sm:$0x1]  ;;  %v4313_v4 = vld [vmem:[%s4588_s13 + $0x18] sm:$0xff]  }
  0x7a   : > { %4125 = vmatprep.subr.bf16.mxu1 %v4312_v3  ;;  %4096 = vmatpush3.bf16.msra.mxu0 %v4306_v26  ;;  %v1549_v60 = vrot.slane %v1548_v58, 4  ;;  %v1857_v36 = vsel %vm4780_vm7, %v3553_v10, %v1856_v20  ;;  %v1858_v30 = vrot.slane %v1856_v20, 4  ;;  %v1565_v59 = vshll.u32 %v3507_v47, 16 }
  0x7b   : > { %4057 = vmatprep.mubr.msk.bf16.mxu0 %vm525_vm2, %v3522_v13  ;;  %4097 = vmatprep.subr.bf16.mxu0 %v4308_v61  ;;  %v1544_v31 = vsel %vm4619_vm4, %v1539_v28, %v1543_v24  ;;  %v1558_v33 = vrot.slane %v1556_v48, 4  ;;  %v1561_v34 = vrot.slane %v1559_v50, 5  ;;  %v1569_v26 = vshrl.u32 %v3507_v47, 16  ;;  %v3637_v24 = vld [vmem:[%s4588_s13 + $0x30] sm:$0xf] }
  0x7c   : > { %4084 = vmatmul.mubr.msk.bf16.gmra.mxu1 %vm525_vm2, %v3569_v17  ;;  %v1554_v37 = vsel %vm4619_vm4, %v1549_v60, %v1553_v19  ;;  %v1860_v35 = vsel %vm4780_vm7, %v1858_v30, %v1859_v29  ;;  %v1567_v38 = vrot.slane %v1565_v59, 5  ;;  %v1575_v18 = vshll.u32 %v3508_v25, 16  ;;  %v5155_v28 = vld [vmem:[%s4588_s13 + $0x34] sm:$0xf] }
  0x7d   : > { %4126 = vmatpush3.bf16.msra.mxu1 %v4312_v3  ;;  %v3524_v41 = vcombine.low %v1544_v31, %v1554_v37  ;;  %v3570_v32 = vcombine.low %v1857_v36, %v1860_v35  ;;  %v1562_v45 = vor.u32 %v1561_v34, %v1558_v33  ;;  %v1571_v42 = vrot.slane %v1569_v26, 4  ;;  %v5163_v36 = vld [vmem:[%s4588_s13 + $0x38] sm:$0x1]  ;;  %v3640_v34 = vld [vmem:[%s4588_s13 + $0x3c] sm:$0xf] }
  0x7e   : > { %4098 = vmatpush3.bf16.msra.mxu0 %v4308_v61  ;;  %v1577_v53 = vrot.slane %v1575_v18, 5  ;;  %v3554_v54 = vrot.slane %v3546_v6, 9  ;;  %v1863_v13 = vrot.slane %v3507_v47, 5  ;;  %v1866_v55 = vrot.slane %v3508_v25, 5  ;;  %4188 = vmatprep.subr.msk.bf16.mxu1 %vm550_vm0, %v4315_v52  ;;  %v4314_v6 = vld [vmem:[%s4588_s13 + $0x24] sm:$0xff]  }
  0x7f   : > { %4099 = vmatprep.subr.bf16.mxu0 %v4311_v22  ;;  %4087 = vmatprep.mubr.msk.bf16.mxu1 %vm525_vm2, %v3570_v32  ;;  %v1563_v1 = vrot.slane %v1562_v45, 4  ;;  %v1572_v62 = vor.u32 %v1571_v42, %v1567_v38  ;;  %v2331_v3 = vshrl.u32 %v3631_v2, 16  ;;  %v2334_v14 = vshll.u32 %v3631_v2, 16 }
  0x80   : > { %v1864_v21 = vsel %vm4780_vm7, %v3554_v54, %v1863_v13  ;;  %v1865_v23 = vrot.slane %v1863_v13, 4  ;;  %v2340_v43 = vshll.u32 %v5118_v40, 16  ;;  %v2344_v57 = vshrl.u32 %v5118_v40, 16  ;;  %v5179_v13 = vld [vmem:[%s5702_s1 + $0x138] sm:$0xff]  }
  0x81   : > { %4058 = vmatmul.mubr.msk.bf16.gmra.mxu0 %vm525_vm2, %v3523_v15  ;;  %v1568_v61 = vsel %vm4619_vm4, %v1563_v1, %v1567_v38  ;;  %v1573_v7 = vrot.slane %v1572_v62, 4  ;;  %v2333_v11 = vrot.slane %v2331_v3, 4  ;;  %v2336_v44 = vrot.slane %v2334_v14, 5  ;;  %v5186_v62 = vld [vmem:[%s4588_s13 + $0x44] sm:$0x1] }
  0x82   : > { %4061 = vmatprep.mubr.msk.bf16.mxu0 %vm525_vm2, %v3524_v41  ;;  %4100 = vmatpush3.bf16.msra.mxu0 %v4311_v22  ;;  %v1867_v63 = vsel %vm4780_vm7, %v1865_v23, %v1866_v55  ;;  %v2342_v49 = vrot.slane %v2340_v43, 5  ;;  %v2346_v5 = vrot.slane %v2344_v57, 4  ;;  %v2350_v12 = vshll.u32 %v5121_v46, 16  ;;  %v4316_v41 = vld [vmem:[%s4588_s13 + $0x30] sm:$0xff]   ;;  %v5182_v55 = vld [vmem:[%s4588_s13 + $0x40] sm:$0xf] }
  0x83   : > { %4187 = vmatprep.subr.msk.bf16.mxu0 %vm550_vm0, %v4315_v52  ;;  %v1578_v51 = vsel %vm4619_vm4, %v1573_v7, %v1577_v53  ;;  %v3571_v16 = vcombine.low %v1864_v21, %v1867_v63  ;;  %v2337_v17 = vor.u32 %v2336_v44, %v2333_v11  ;;  %v2355_v9 = vshrl.u32 %v3634_v0, 16 }
  0x84   : > { %v3525_v10 = vcombine.low %v1568_v61, %v1578_v51  ;;  %v2347_v47 = vor.u32 %v2346_v5, %v2342_v49  ;;  %v2352_v15 = vrot.slane %v2350_v12, 5  ;;  %v2358_v58 = vshll.u32 %v3634_v0, 16  ;;  %v3643_v61 = vld [vmem:[%s4588_s13 + $0x48] sm:$0xf]  ;;  %v5197_v51 = vld [vmem:[%s4588_s13 + $0x4c] sm:$0xf] }
  0x85   : > { %4088 = vmatmul.mubr.msk.bf16.gmra.mxu1 %vm525_vm2, %v3571_v16  ;;  %v2338_v19 = vrot.slane %v2337_v17, 4  ;;  %v2357_v20 = vrot.slane %v2355_v9, 4  ;;  %v2364_v25 = vshll.u32 %v5135_v56, 16  ;;  %v2368_v22 = vshrl.u32 %v5135_v56, 16  ;;  %v5200_v16 = vld [vmem:[%s4588_s13 + $0x50] sm:$0x1] }
  0x86   : > { %v2348_v29 = vrot.slane %v2347_v47, 4  ;;  %v2360_v48 = vrot.slane %v2358_v58, 5  ;;  %v2374_v50 = vshll.u32 %v5141_v8, 16  ;;  %v5160_v60 = vsel %vm550_vm0, %v4315_v52, 0  ;;  %v3646_v47 = vld [vmem:[%s4588_s13 + $0x54] sm:$0xf] }
  0x87   : > { %v2343_v30 = vsel %vm4619_vm4, %v2338_v19, %v2342_v49  ;;  %v2366_v59 = vrot.slane %v2364_v25, 5  ;;  %v2370_v31 = vrot.slane %v2368_v22, 4  ;;  %v2379_v33 = vshrl.u32 %v3637_v24, 16  ;;  %v4318_v19 = vld [vmem:[%s4588_s13 + $0x3c] sm:$0xff]   ;;  %v4319_v25 = vld [vmem:[%s5702_s1 + $0x130] sm:$0xff]  }
  0x88   : > { %v2353_v26 = vsel %vm4619_vm4, %v2348_v29, %v2352_v15  ;;  %v2361_v37 = vor.u32 %v2360_v48, %v2357_v20  ;;  %v2376_v35 = vrot.slane %v2374_v50, 5  ;;  %v2382_v38 = vshll.u32 %v3637_v24, 16  ;;  %v5215_v29 = vld [vmem:[%s4588_s13 + $0x58] sm:$0xf] }
  0x89   : > { %4062 = vmatmul.mubr.msk.bf16.gmra.mxu0 %vm525_vm2, %v3525_v10  ;;  %v3664_v18 = vcombine.low %v2343_v30, %v2353_v26  ;;  %v2371_v2 = vor.u32 %v2370_v31, %v2366_v59  ;;  %v2381_v32 = vrot.slane %v2379_v33, 4  ;;  %v2388_v45 = vshll.u32 %v5155_v28, 16 }
  0x8a   : > { %4101 = vmatprep.mubr.msk.bf16.mxu0 %vm525_vm2, %v4313_v4  ;;  %v2362_v42 = vrot.slane %v2361_v37, 4  ;;  %v2384_v52 = vrot.slane %v2382_v38, 5  ;;  %v2392_v53 = vshrl.u32 %v5155_v28, 16  ;;  %v2398_v54 = vshll.u32 %v5163_v36, 16 }
  0x8b   : > { %4127 = vmatprep.mubr.msk.bf16.mxu1 %vm525_vm2, %v3664_v18  ;;  %v2372_v0 = vrot.slane %v2371_v2, 4  ;;  %v2390_v1 = vrot.slane %v2388_v45, 5  ;;  %v2403_v3 = vshrl.u32 %v3640_v34, 16  ;;  %v2406_v14 = vshll.u32 %v3640_v34, 16 }
  0x8c   : > { %v2367_v21 = vsel %vm4619_vm4, %v2362_v42, %v2366_v59  ;;  %v2385_v23 = vor.u32 %v2384_v52, %v2381_v32  ;;  %v2394_v43 = vrot.slane %v2392_v53, 4  ;;  %v2400_v57 = vrot.slane %v2398_v54, 5  ;;  %v5229_v32 = vld [vmem:[%s4588_s13 + $0x5c] sm:$0x1]  ;;  %v5234_v42 = vld [vmem:[%s5702_s1 + $0x128] sm:$0xff]  }
  0x8d   : > { %v2377_v7 = vsel %vm4619_vm4, %v2372_v0, %v2376_v35  ;;  %v2405_v11 = vrot.slane %v2403_v3, 4  ;;  %v2408_v44 = vrot.slane %v2406_v14, 5  ;;  %v2412_v63 = vshll.u32 %v5182_v55, 16 }
  0x8e   : > { %v3665_v49 = vcombine.low %v2367_v21, %v2377_v7  ;;  %v2386_v5 = vrot.slane %v2385_v23, 4  ;;  %v2395_v12 = vor.u32 %v2394_v43, %v2390_v1  ;;  %v2416_v24 = vshrl.u32 %v5182_v55, 16  ;;  %v3649_v23 = vld [vmem:[%s4588_s13 + $0x60] sm:$0xf] }
  0x8f   : > { %v2409_v4 = vor.u32 %v2408_v44, %v2405_v11  ;;  %v2414_v17 = vrot.slane %v2412_v63, 5  ;;  %v2422_v9 = vshll.u32 %v5186_v62, 16  ;;  %v2427_v10 = vshrl.u32 %v3643_v61, 16 }
  0x90   : > { %4128 = vmatmul.mubr.msk.bf16.vlgmr.msra.gmra.mxu1 %vm525_vm2, %v3665_v49  ;;  %v2391_v15 = vsel %vm4619_vm4, %v2386_v5, %v2390_v1  ;;  %v2396_v58 = vrot.slane %v2395_v12, 4  ;;  %v2418_v20 = vrot.slane %v2416_v24, 4  ;;  %v2430_v22 = vshll.u32 %v3643_v61, 16  ;;  %v5254_v5 = vld [vmem:[%s4588_s13 + $0x68] sm:$0x1]  ;;  %v4325_v12 = vld [vmem:[%s5702_s1 + $0x120] sm:$0xff]  }
  0x91   : > { %4102 = vmatmul.mubr.msk.bf16.vlgmr.msra.gmra.mxu0 %vm525_vm2, %v4314_v6  ;;  %v2410_v48 = vrot.slane %v2409_v4, 4  ;;  %v2424_v50 = vrot.slane %v2422_v9, 5  ;;  %4174 = vmatpush3.bf16.msra.mxu1 %v5160_v60  ;;  %v2429_v30 = vrot.slane %v2427_v10, 4  ;;  %v2436_v59 = vshll.u32 %v5197_v51, 16 }
  0x92   : > { %4144 = vmatpush3.bf16.msra.mxu0 %v5160_v60  ;;  %4105 = vmatprep.mubr.msk.bf16.mxu0 %vm525_vm2, %v4316_v41  ;;  %v2401_v31 = vsel %vm4619_vm4, %v2396_v58, %v2400_v57  ;;  %v2419_v33 = vor.u32 %v2418_v20, %v2414_v17  ;;  %v2432_v34 = vrot.slane %v2430_v22, 5  ;;  %v2440_v26 = vshrl.u32 %v5197_v51, 16  ;;  %v4320_v60 = vld [vmem:[%s4588_s13 + $0x48] sm:$0xff]  }
  0x93   : > { %4145 = vmatprep.subr.bf16.mxu0 %v5179_v13  ;;  %4170 = vmatprep.subr.bf16.mxu1 %v5179_v13  ;;  %v3666_v6 = vcombine.low %v2391_v15, %v2401_v31  ;;  %v2415_v37 = vsel %vm4619_vm4, %v2410_v48, %v2414_v17  ;;  %v2438_v35 = vrot.slane %v2436_v59, 5  ;;  %v2446_v38 = vshll.u32 %v5200_v16, 16  ;;  %v3652_v20 = vld [vmem:[%s4588_s13 + $0x6c] sm:$0xf] }
  0x94   : > { %v2420_v18 = vrot.slane %v2419_v33, 4  ;;  %v2433_v2 = vor.u32 %v2432_v34, %v2429_v30  ;;  %v2442_v41 = vrot.slane %v2440_v26, 4  ;;  %v2451_v45 = vshrl.u32 %v3646_v47, 16  ;;  %v4323_v30 = vld [vmem:[%s4588_s13 + $0x60] sm:$0xff]   ;;  %v5276_v26 = vld [vmem:[%s4588_s13 + $0x70] sm:$0xf] }
  0x95   : > { %4131 = vmatprep.mubr.msk.bf16.mxu1 %vm525_vm2, %v3666_v6  ;;  %v2448_v52 = vrot.slane %v2446_v38, 5  ;;  %v2454_v53 = vshll.u32 %v3646_v47, 16  ;;  %v2460_v54 = vshll.u32 %v5215_v29, 16  ;;  %v2464_v0 = vshrl.u32 %v5215_v29, 16  ;;  %4175 = vmatpush3.bf16.msra.mxu1 %v5179_v13  ;;  %v4321_v47 = vld [vmem:[%s4588_s13 + $0x54] sm:$0xff]  }
  0x96   : > { %4146 = vmatpush3.bf16.msra.mxu0 %v5179_v13  ;;  %v2425_v1 = vsel %vm4619_vm4, %v2420_v18, %v2424_v50  ;;  %v2434_v3 = vrot.slane %v2433_v2, 4  ;;  %v2443_v14 = vor.u32 %v2442_v41, %v2438_v35  ;;  %v2453_v21 = vrot.slane %v2451_v45, 4  ;;  %4171 = vmatprep.subr.bf16.mxu1 %v4319_v25  ;;  %v5246_v13 = vld [vmem:[%s4588_s13 + $0x64] sm:$0xf] }
  0x97   : > { %4147 = vmatprep.subr.bf16.mxu0 %v4319_v25  ;;  %v3667_v43 = vcombine.low %v2415_v37, %v2425_v1  ;;  %v2456_v57 = vrot.slane %v2454_v53, 5  ;;  %v2462_v61 = vrot.slane %v2460_v54, 5  ;;  %v2466_v7 = vrot.slane %v2464_v0, 4 }
  0x98   : > { %v2439_v11 = vsel %vm4619_vm4, %v2434_v3, %v2438_v35  ;;  %v2444_v44 = vrot.slane %v2443_v14, 4  ;;  %v2470_v63 = vshll.u32 %v5229_v32, 16  ;;  %v2792_v49 = vrot.slane %v5215_v29, 5 }
  0x99   : > { %4106 = vmatmul.mubr.msk.bf16.gmra.mxu0 %vm525_vm2, %v4318_v19  ;;  %4132 = vmatmul.mubr.msk.bf16.gmra.mxu1 %vm525_vm2, %v3667_v43  ;;  %v2457_v24 = vor.u32 %v2456_v57, %v2453_v21  ;;  %v2467_v4 = vor.u32 %v2466_v7, %v2462_v61  ;;  %v2795_v17 = vrot.slane %v5229_v32, 5  ;;  %v2475_v9 = vshrl.u32 %v3649_v23, 16  ;;  %v3689_v7 = vld [vmem:[%s4588_s13 + $0x48] sm:$0xe] }
  0x9a   : > { %4148 = vmatpush3.bf16.msra.mxu0 %v4319_v25  ;;  %4109 = vmatprep.mubr.msk.bf16.mxu0 %vm525_vm2, %v4320_v60  ;;  %v2449_v10 = vsel %vm4619_vm4, %v2444_v44, %v2448_v52  ;;  %v2472_v15 = vrot.slane %v2470_v63, 5  ;;  %v5266_v58 = vrot.slane %v2792_v49, 4  ;;  %v2478_v19 = vshll.u32 %v3649_v23, 16  ;;  %v5284_v60 = vld [vmem:[%s4588_s13 + $0x74] sm:$0x1]  ;;  %v4324_v63 = vld [vmem:[%s4588_s13 + $0x6c] sm:$0xff]  }
  0x9b   : > { %4149 = vmatprep.subr.bf16.mxu0 %v5234_v42  ;;  %4176 = vmatpush3.bf16.msra.mxu1 %v4319_v25  ;;  %v3668_v22 = vcombine.low %v2439_v11, %v2449_v10  ;;  %v2458_v48 = vrot.slane %v2457_v24, 4  ;;  %v2468_v50 = vrot.slane %v2467_v4, 4  ;;  %v2477_v59 = vrot.slane %v2475_v9, 4  ;;  %v3685_v52 = vld [vmem:[%s4588_s13 + $0x18] sm:$0xe] }
  0x9c   : > { %4172 = vmatprep.subr.bf16.mxu1 %v5234_v42  ;;  %v2480_v31 = vrot.slane %v2478_v19, 5  ;;  %v2484_v33 = vshll.u32 %v5246_v13, 16  ;;  %v2488_v34 = vshrl.u32 %v5246_v13, 16  ;;  %v2494_v25 = vshll.u32 %v5254_v5, 16 }
  0x9d   : > { %4135 = vmatprep.mubr.msk.bf16.mxu1 %vm525_vm2, %v3668_v22  ;;  %v2463_v6 = vsel %vm4619_vm4, %v2458_v48, %v2462_v61  ;;  %v2473_v37 = vsel %vm4619_vm4, %v2468_v50, %v2472_v15  ;;  %v2499_v35 = vshrl.u32 %v3652_v20, 16  ;;  %v2502_v38 = vshll.u32 %v3652_v20, 16  ;;  %v3686_v48 = vld [vmem:[%s4588_s13 + $0x24] sm:$0xe]  ;;  %v3690_v50 = vld [vmem:[%s4588_s13 + $0x54] sm:$0xe] }
  0x9e   : > { %4150 = vmatpush3.bf16.msra.mxu0 %v5234_v42  ;;  %v3669_v18 = vcombine.low %v2463_v6, %v2473_v37  ;;  %v2481_v2 = vor.u32 %v2480_v31, %v2477_v59  ;;  %v2486_v41 = vrot.slane %v2484_v33, 5  ;;  %v2490_v45 = vrot.slane %v2488_v34, 4 }
  0x9f   : > { %4151 = vmatprep.subr.bf16.mxu0 %v4325_v12  ;;  %4177 = vmatpush3.bf16.msra.mxu1 %v5234_v42  ;;  %v2496_v53 = vrot.slane %v2494_v25, 5  ;;  %v2501_v54 = vrot.slane %v2499_v35, 4  ;;  %v2504_v0 = vrot.slane %v2502_v38, 5  ;;  %v2508_v1 = vshll.u32 %v5276_v26, 16 }
  0xa0   : > { %v2482_v3 = vrot.slane %v2481_v2, 4  ;;  %v2491_v14 = vor.u32 %v2490_v45, %v2486_v41  ;;  %v2512_v21 = vshrl.u32 %v5276_v26, 16  ;;  %v2518_v23 = vshll.u32 %v5284_v60, 16  ;;  %4173 = vmatprep.subr.bf16.mxu1 %v4325_v12 }
  0xa1   : > { %4110 = vmatmul.mubr.msk.bf16.gmra.mxu0 %vm525_vm2, %v4321_v47  ;;  %4136 = vmatmul.mubr.msk.bf16.gmra.mxu1 %vm525_vm2, %v3669_v18  ;;  %v2505_v42 = vor.u32 %v2504_v0, %v2501_v54  ;;  %v2510_v43 = vrot.slane %v2508_v1, 5  ;;  %v3693_v57 = vrot.slane %v3685_v52, 9  ;;  %v2757_v61 = vrot.slane %v5118_v40, 5  ;;  %v3691_v18 = vld [vmem:[%s4588_s13 + $0x60] sm:$0xe] }
  0xa2   : > { %4113 = vmatprep.mubr.msk.bf16.mxu0 %vm525_vm2, %v4323_v30  ;;  %4152 = vmatpush3.bf16.msra.mxu0 %v4325_v12  ;;  %v2487_v11 = vsel %vm4619_vm4, %v2482_v3, %v2486_v41  ;;  %v2492_v44 = vrot.slane %v2491_v14, 4  ;;  %v2514_v24 = vrot.slane %v2512_v21, 4  ;;  %v2520_v4 = vrot.slane %v2518_v23, 5 }
  0xa3   : > { %4178 = vmatpush3.bf16.msra.mxu1 %v4325_v12  ;;  %v2506_v9 = vrot.slane %v2505_v42, 4  ;;  %v2758_v10 = vsel %vm4780_vm7, %v3693_v57, %v2757_v61  ;;  %v2759_v47 = vrot.slane %v2757_v61, 4  ;;  %v2760_v15 = vrot.slane %v5121_v46, 5  ;;  %v3687_v46 = vld [vmem:[%s4588_s13 + $0x30] sm:$0xe] }
  0xa4   : > { %v2497_v40 = vsel %vm4619_vm4, %v2492_v44, %v2496_v53  ;;  %v2515_v19 = vor.u32 %v2514_v24, %v2510_v43  ;;  %v3697_v20 = vrot.slane %v3689_v7, 9  ;;  %v2785_v22 = vrot.slane %v5197_v51, 5 }
  0xa5   : > { %v3670_v30 = vcombine.low %v2487_v11, %v2497_v40  ;;  %v2511_v12 = vsel %vm4619_vm4, %v2506_v9, %v2510_v43  ;;  %v2761_v59 = vsel %vm4780_vm7, %v2759_v47, %v2760_v15  ;;  %v2788_v31 = vrot.slane %v5200_v16, 5  ;;  %v3692_v43 = vld [vmem:[%s4588_s13 + $0x6c] sm:$0xe] }
  0xa6   : > { %v2516_v33 = vrot.slane %v2515_v19, 4  ;;  %v3710_v34 = vcombine.low %v2758_v10, %v2761_v59  ;;  %v2786_v51 = vsel %vm4780_vm7, %v3697_v20, %v2785_v22  ;;  %v2787_v25 = vrot.slane %v2785_v22, 4 }
  0xa7   : > { %4139 = vmatprep.mubr.msk.bf16.mxu1 %vm525_vm2, %v3670_v30  ;;  %v3694_v6 = vrot.slane %v3686_v48, 9  ;;  %v2764_v37 = vrot.slane %v5135_v56, 5  ;;  %v2767_v35 = vrot.slane %v5141_v8, 5  ;;  %v3698_v38 = vrot.slane %v3690_v50, 9  ;;  %v3688_v56 = vld [vmem:[%s4588_s13 + $0x3c] sm:$0xe] }
  0xa8   : > { %v2521_v16 = vsel %vm4619_vm4, %v2516_v33, %v2520_v4  ;;  %v2789_v2 = vsel %vm4780_vm7, %v2787_v25, %v2788_v31  ;;  %v3695_v41 = vrot.slane %v3687_v46, 9  ;;  %v2796_v39 = vsel %vm4780_vm7, %v5266_v58, %v2795_v17  ;;  %s5503_s13 = sand.u32 1, %s4442_s16  }
  0xa9   : > { %4114 = vmatmul.mubr.msk.bf16.gmra.mxu0 %vm525_vm2, %v4324_v63  ;;  %v3671_v45 = vcombine.low %v2511_v12, %v2521_v16  ;;  %v3714_v52 = vcombine.low %v2786_v51, %v2789_v2  ;;  %v2765_v53 = vsel %vm4780_vm7, %v3694_v6, %v2764_v37  ;;  %v2766_v54 = vrot.slane %v2764_v37, 4  ;;  %s3348_s5 = sshll.u32 %s5503_s13, 6  ;;  %s3153_s12 = scalar_lea.sflag [#allocation3], %s5503_s13 }
  0xaa   : > { %4153 = vmatprep.mubr.msk.bf16.mxu0 %vm525_vm2, %v3710_v34  ;;  %v2771_v8 = vrot.slane %v5155_v28, 5  ;;  %v2774_v0 = vrot.slane %v5163_v36, 5  ;;  %v3699_v1 = vrot.slane %v3691_v18, 9  ;;  %v2793_v32 = vsel %vm4780_vm7, %v3698_v38, %v2792_v49  ;;  %s5529_s6 = scalar_lea.vmem [#allocation2], %s3348_s5 }
  0xab   : > { %4140 = vmatmul.mubr.msk.bf16.gmra.mxu1 %vm525_vm2, %v3671_v45  ;;  %v2768_v3 = vsel %vm4780_vm7, %v2766_v54, %v2767_v35  ;;  %v2799_v14 = vrot.slane %v5246_v13, 5  ;;  %v2802_v17 = vrot.slane %v5254_v5, 5  ;;  %v3696_v21 = vrot.slane %v3688_v56, 9  ;;  %s3177_s8 = sshll.u32 %s5529_s6, 4  ;;  %s5565_s8 = int_to_ptr.vmem [resolvable:$true] %s3177_s8 }
  0xac   : > { %4161 = vmatprep.mubr.msk.bf16.mxu1 %vm525_vm2, %v3714_v52  ;;  %v3711_v28 = vcombine.low %v2765_v53, %v2768_v3  ;;  %v2772_v36 = vsel %vm4780_vm7, %v3695_v41, %v2771_v8  ;;  %v2773_v58 = vrot.slane %v2771_v8, 4  ;;  %v2778_v29 = vrot.slane %v5182_v55, 5  ;;  %s4326_s14 = scalar_lea.vmem %s5565_s8, 1024  ;;  %p4333_p1 = scmp.lt.s32.totalorder %s5565_s8, %s4331_s26 }
  0xad   : > { %v2800_v23 = vsel %vm4780_vm7, %v3699_v1, %v2799_v14  ;;  %v2801_v42 = vrot.slane %v2799_v14, 4  ;;  %v2781_v49 = vrot.slane %v5186_v62, 5  ;;  %v3715_v13 = vcombine.low %v2793_v32, %v2796_v39  ;;  %p4327_p12 = scmp.ne.s32.totalorder %s5565_s8, %s4326_s14  ;;  %p4334_p2 = scmp.lt.s32.totalorder %s4332_s29, %s4326_s14 }
  0xae   : > { %v2775_v5 = vsel %vm4780_vm7, %v2773_v58, %v2774_v0  ;;  %v2806_v57 = vrot.slane %v5276_v26, 5  ;;  %v2779_v11 = vsel %vm4780_vm7, %v3696_v21, %v2778_v29  ;;  %v2780_v44 = vrot.slane %v2778_v29, 4 }
  0xaf   : > { %v3712_v61 = vcombine.low %v2772_v36, %v2775_v5  ;;  %v2803_v7 = vsel %vm4780_vm7, %v2801_v42, %v2802_v17  ;;  %v3700_v63 = vrot.slane %v3692_v43, 9  ;;  %v2809_v24 = vrot.slane %v5284_v60, 5  ;;  %p4328_p13 = pnand %p4327_p12, %p4532_p4  ;;  %p4335_p3 = por %p4334_p2, %p4333_p1 }
  0xb0   : > { %v3716_v55 = vcombine.low %v2800_v23, %v2803_v7  ;;  %v2808_v62 = vrot.slane %v2806_v57, 4  ;;  %v2782_v4 = vsel %vm4780_vm7, %v2780_v44, %v2781_v49 }
  0xb1   : > { %4154 = vmatmul.mubr.msk.bf16.vlgmr.msra.gmra.mxu0 %vm525_vm2, %v3711_v28  ;;  %v3713_v9 = vcombine.low %v2779_v11, %v2782_v4  ;;  %v2807_v26 = vsel %vm4780_vm7, %v3700_v63, %v2806_v57  ;;  %p4329_p0 = pneg %p4328_p13 }
  0xb2   : > { %4157 = vmatprep.mubr.msk.bf16.mxu0 %vm525_vm2, %v3712_v61  ;;  %v2810_v10 = vsel %vm4780_vm7, %v2808_v62, %v2809_v24 }
  0xb3   : > { %4162 = vmatmul.mubr.msk.bf16.vlgmr.msra.gmra.mxu1 %vm525_vm2, %v3715_v13  ;;  %v3717_v47 = vcombine.low %v2807_v26, %v2810_v10  ;;  %p4336_p5 = pnand %p4335_p3, %p4329_p0 }
  0xb4   : > { %4165 = vmatprep.mubr.msk.bf16.mxu1 %vm525_vm2, %v3716_v55 }
  0xb9   : > { %4158 = vmatmul.mubr.msk.bf16.gmra.mxu0 %vm525_vm2, %v3713_v9 }
  0xbb   : > { %4166 = vmatmul.mubr.msk.bf16.gmra.mxu1 %vm525_vm2, %v3717_v47 }
  0xec   : > { %v3973_v60 = vpop.f32.mrf.mxu1 }
  0xed   : > { %v3947_v19 = vpop.f32.mrf.mxu0 }
  0xee   : > { %v779_v15 = vpop.f32.mrf.mxu1  ;;  %v788_v20 = vadd.f32 %v3973_v60, %v3947_v19 }
  0xef   : > { %v588_v48 = vpop.f32.mrf.mxu0 }
  0xf0   : > { %v3974_v40 = vpop.f32.mrf.mxu1  ;;  %v780_v50 = vadd.f32 %v779_v15, %v588_v48 }
  0xf1   : > { %v3948_v12 = vpop.f32.mrf.mxu0 }
  0xf2   : > { %v782_v22 = vpop.f32.mrf.mxu1  ;;  %v791_v59 = vadd.f32 %v3974_v40, %v3948_v12 }
  0xf3   : > { %v591_v46 = vpop.f32.mrf.mxu0 }
  0xf4   : > { %v3977_v30 = vpop.f32.mrf.mxu1  ;;  %v783_v27 = vadd.f32 %v782_v22, %v591_v46 }
  0xf6   : > { %v795_v31 = vpop.f32.mrf.mxu1 }
  0xf7   : > { %v3951_v51 = vpop.f32.mrf.mxu0 }
  0xf8   : > { %v3978_v33 = vpop.f32.mrf.mxu1  ;;  %v804_v25 = vadd.f32 %v3977_v30, %v3951_v51 }
  0xf9   : > { %v604_v6 = vpop.f32.mrf.mxu0 }
  0xfa   : > { %v798_v34 = vpop.f32.mrf.mxu1  ;;  %v796_v35 = vadd.f32 %v795_v31, %v604_v6 }
  0xfb   : > { %v3952_v38 = vpop.f32.mrf.mxu0 }
  0xfc   : > { %v3981_v37 = vpop.f32.mrf.mxu1  ;;  %v807_v16 = vadd.f32 %v3978_v33, %v3952_v38 }
  0xfd   : > { %v607_v2 = vpop.f32.mrf.mxu0 }
  0xfe   : > { %v811_v18 = vpop.f32.mrf.mxu1  ;;  %v799_v45 = vadd.f32 %v798_v34, %v607_v2 }
 0x100   : > { %v3982_v41 = vpop.f32.mrf.mxu1  ;;  %v3955_v53 = vpop.f32.mrf.mxu0 }
 0x101   : > { %v820_v54 = vadd.f32 %v3981_v37, %v3955_v53 }
 0x102   : > { %v814_v52 = vpop.f32.mrf.mxu1  ;;  %v620_v39 = vpop.f32.mrf.mxu0 }
 0x103   : > { %v812_v8 = vadd.f32 %v811_v18, %v620_v39 }
 0x104   : > { %v3985_v56 = vpop.f32.mrf.mxu1  ;;  %v3956_v1 = vpop.f32.mrf.mxu0 }
 0x105   : > { %v823_v3 = vadd.f32 %v3982_v41, %v3956_v1 }
 0x106   : > { %v827_v0 = vpop.f32.mrf.mxu1  ;;  %v623_v14 = vpop.f32.mrf.mxu0 }
 0x107   : > { %v815_v17 = vadd.f32 %v814_v52, %v623_v14 }
 0x108   : > { %v3986_v32 = vpop.f32.mrf.mxu1 }
 0x109   : > { %v3959_v36 = vpop.f32.mrf.mxu0 }
 0x10a   : > { %v830_v28 = vpop.f32.mrf.mxu1  ;;  %v836_v58 = vadd.f32 %v3985_v56, %v3959_v36 }
 0x10b   : > { %v636_v23 = vpop.f32.mrf.mxu0 }
 0x10c   : > { %v4025_v21 = vpop.f32.mrf.mxu1  ;;  %v828_v42 = vadd.f32 %v827_v0, %v636_v23 }
 0x10d   : > { %v3960_v49 = vpop.f32.mrf.mxu0 }
 0x10e   : > { %v1284_v29 = vpop.f32.mrf.mxu1  ;;  %v839_v43 = vadd.f32 %v3986_v32, %v3960_v49 }
 0x10f   : > { %v639_v5 = vpop.f32.mrf.mxu0 }
 0x110   : > { %v4026_v13 = vpop.f32.mrf.mxu1  ;;  %v5372_v57 = vadd.f32 %v830_v28, %v639_v5 }
 0x111   : > { %v3999_v7 = vpop.f32.mrf.mxu0 }
 0x112   : > { %v1287_v61 = vpop.f32.mrf.mxu1  ;;  %v1112_v11 = vadd.f32 %v3999_v7, %v788_v20 }
 0x113   : > { %v1047_v44 = vpop.f32.mrf.mxu0 }
 0x114   : > { %v4029_v55 = vpop.f32.mrf.mxu1  ;;  %v5374_v63 = vadd.f32 %v4025_v21, %v1112_v11  ;;  %v1110_v62 = vadd.f32 %v1047_v44, %v780_v50 }
 0x115   : > { %v4000_v24 = vpop.f32.mrf.mxu0 }
 0x116   : > { %v1300_v4 = vpop.f32.mrf.mxu1  ;;  %v5376_v9 = vadd.f32 %v1284_v29, %v1110_v62  ;;  %v1113_v26 = vadd.f32 %v4000_v24, %v791_v59 }
 0x117   : > { %v1050_v10 = vpop.f32.mrf.mxu0 }
 0x118   : > { %v4030_v47 = vpop.f32.mrf.mxu1  ;;  %v5378_v60 = vadd.f32 %v4026_v13, %v1113_v26  ;;  %v1111_v15 = vadd.f32 %v1050_v10, %v783_v27 }
 0x119   : > { %v4003_v40 = vpop.f32.mrf.mxu0 }
 0x11a   : > { %v1303_v19 = vpop.f32.mrf.mxu1  ;;  %v5380_v22 = vadd.f32 %v1287_v61, %v1111_v15  ;;  %v1116_v20 = vadd.f32 %v4003_v40, %v804_v25 }
 0x11b   : > { %v1063_v48 = vpop.f32.mrf.mxu0 }
 0x11c   : > { %v4033_v30 = vpop.f32.mrf.mxu1  ;;  %v5382_v12 = vadd.f32 %v4029_v55, %v1116_v20  ;;  %v1114_v50 = vadd.f32 %v1063_v48, %v796_v35 }
 0x11d   : > { %v4004_v31 = vpop.f32.mrf.mxu0 }
 0x11e   : > { %v1316_v46 = vpop.f32.mrf.mxu1  ;;  %v5384_v33 = vadd.f32 %v1300_v4, %v1114_v50  ;;  %v1117_v59 = vadd.f32 %v4004_v31, %v807_v16 }
 0x11f   : > { %v1066_v34 = vpop.f32.mrf.mxu0 }
 0x120   : > { %v4034_v51 = vpop.f32.mrf.mxu1  ;;  %v5386_v6 = vadd.f32 %v4030_v47, %v1117_v59  ;;  %v1115_v27 = vadd.f32 %v1066_v34, %v799_v45 }
 0x121   : > { %v4007_v37 = vpop.f32.mrf.mxu0 }
 0x122   : > { %v1319_v38 = vpop.f32.mrf.mxu1  ;;  %v5388_v18 = vadd.f32 %v1303_v19, %v1115_v27  ;;  %v1120_v25 = vadd.f32 %v4007_v37, %v820_v54 }
 0x123   : > { %v1079_v2 = vpop.f32.mrf.mxu0 }
 0x124   : > { %v4037_v41 = vpop.f32.mrf.mxu1  ;;  %v5390_v52 = vadd.f32 %v4033_v30, %v1120_v25  ;;  %v1118_v35 = vadd.f32 %v1079_v2, %v812_v8 }
 0x125   : > { %v4008_v53 = vpop.f32.mrf.mxu0 }
 0x126   : > { %v1332_v56 = vpop.f32.mrf.mxu1  ;;  %v5392_v39 = vadd.f32 %v1316_v46, %v1118_v35  ;;  %v1121_v16 = vadd.f32 %v4008_v53, %v823_v3 }
 0x127   : > { %v1082_v0 = vpop.f32.mrf.mxu0 }
 0x128   : > { %v4038_v1 = vpop.f32.mrf.mxu1  ;;  %v5394_v32 = vadd.f32 %v4034_v51, %v1121_v16  ;;  %v1119_v45 = vadd.f32 %v1082_v0, %v815_v17 }
 0x129   : > { %v4011_v14 = vpop.f32.mrf.mxu0 }
 0x12a   : > { %v1335_v28 = vpop.f32.mrf.mxu1  ;;  %v5396_v36 = vadd.f32 %v1319_v38, %v1119_v45  ;;  %v1124_v54 = vadd.f32 %v4011_v14, %v836_v58 }
 0x12b   : > { %v1095_v21 = vpop.f32.mrf.mxu0 }
 0x12c   : > { %v5398_v23 = vpop.f32.mrf.mxu1  ;;  %v5400_v29 = vadd.f32 %v4037_v41, %v1124_v54  ;;  %v1122_v8 = vadd.f32 %v1095_v21, %v828_v42 }
 0x12d   : > { %v4012_v49 = vpop.f32.mrf.mxu0 }
 0x12e   : > { %v5402_v13 = vpop.f32.mrf.mxu1  ;;  %v5404_v3 = vadd.f32 %v1332_v56, %v1122_v8  ;;  %v1125_v5 = vadd.f32 %v4012_v49, %v839_v43 }
 0x12f   : > { %v1098_v61 = vpop.f32.mrf.mxu0 }
 0x130   : > { %v5406_v7 = vpop.f32.mrf.mxu1  ;;  %v5408_v17 = vadd.f32 %v4038_v1, %v1125_v5  ;;  %v1123_v11 = vadd.f32 %v1098_v61, %v5372_v57 }
 0x131   : > { %v4051_v58 = vpop.f32.mrf.mxu0 }
 0x132   : > { %v5411_v44 = vpop.f32.mrf.mxu1  ;;  %v5413_v55 = vadd.f32 %v1335_v28, %v1123_v11 }
 0x133   : > { %v1701_v62 = vpop.f32.mrf.mxu0 }
 0x134   : > { %5713 = vst [vmem:[#allocation9_spill] sm:$0xff] %v5413_v55  ;;  %v5415_v42 = vpop.f32.mrf.mxu1 }
 0x135   : > { %v4052_v24 = vpop.f32.mrf.mxu0 }
 0x136   : > { %v5417_v4 = vpop.f32.mrf.mxu1 }
 0x137   : > { %v1704_v26 = vpop.f32.mrf.mxu0 }
 0x138   : > { %v5419_v43 = vpop.f32.mrf.mxu1 }
 0x139   : > { %v4055_v10 = vpop.f32.mrf.mxu0 }
 0x13a   : > { %v5421_v47 = vpop.f32.mrf.mxu1 }
 0x13b   : > { %v1717_v15 = vpop.f32.mrf.mxu0 }
 0x13c   : > { %v5423_v40 = vpop.f32.mrf.mxu1 }
 0x13d   : > { %v4056_v57 = vpop.f32.mrf.mxu0 }
 0x13e   : > { %v5425_v19 = vpop.f32.mrf.mxu1 }
 0x13f   : > { %v1720_v20 = vpop.f32.mrf.mxu0 }
 0x140   : > { %v5427_v48 = vpop.f32.mrf.mxu1 }
 0x141   : > { %v4059_v30 = vpop.f32.mrf.mxu0 }
 0x142   : > { %v5429_v31 = vpop.f32.mrf.mxu1 }
 0x143   : > { %v1733_v50 = vpop.f32.mrf.mxu0  ;;  %5714 = vst [vmem:[#allocation10_spill] sm:$0xff] %v5429_v31  ;;  %v1768_v31 = vadd.f32 %v1717_v15, %v5384_v33 }
 0x145   : > { %v4060_v46 = vpop.f32.mrf.mxu0  ;;  %v5431_v34 = vpop.f32.mrf.mxu1 }
 0x146   : > { %5715 = vst [vmem:[#allocation11_spill] sm:$0xff] %v5431_v34 }
 0x147   : > { %v1736_v59 = vpop.f32.mrf.mxu0  ;;  %v5433_v27 = vpop.f32.mrf.mxu1 }
 0x148   : > { %5716 = vst [vmem:[#allocation12_spill] sm:$0xff] %v5433_v27  ;;  %v1766_v27 = vadd.f32 %v4051_v58, %v5374_v63 }
 0x149   : > { %v4063_v51 = vpop.f32.mrf.mxu0  ;;  %v5435_v38 = vpop.f32.mrf.mxu1 }
 0x14a   : > { %5717 = vst [vmem:[#allocation13_spill] sm:$0xff] %v5435_v38  ;;  %v2055_v63 = vadd.f32 %v5398_v23, %v1766_v27  ;;  %v1778_v23 = vadd.f32 %v4063_v51, %v5400_v29 }
 0x14b   : > { %v1749_v37 = vpop.f32.mrf.mxu0  ;;  %v5437_v41 = vpop.f32.mrf.mxu1 }
 0x14c   : > { %5718 = vst [vmem:[#allocation14_spill] sm:$0xff] %v5437_v41 }
 0x14d   : > { %v4064_v25 = vpop.f32.mrf.mxu0 }
 0x14f   : > { %v1752_v2 = vpop.f32.mrf.mxu0 }
 0x150   : > { %v5439_v53 = vpop.f32.mrf.mxu1 }
 0x151   : > { %v4103_v35 = vpop.f32.mrf.mxu0  ;;  %5719 = vst [vmem:[#allocation15_spill] sm:$0xff] %v5439_v53 }
 0x152   : > { %v5441_v16 = vpop.f32.mrf.mxu1 }
 0x153   : > { %v2227_v56 = vpop.f32.mrf.mxu0  ;;  %5720 = vst [vmem:[#allocation16_spill] sm:$0xff] %v5441_v16 }
 0x154   : > { %v5443_v1 = vpop.f32.mrf.mxu1 }
 0x155   : > { %v4104_v0 = vpop.f32.mrf.mxu0  ;;  %5721 = vst [vmem:[#allocation17_spill] sm:$0xff] %v5443_v1 }
 0x156   : > { %v5445_v14 = vpop.f32.mrf.mxu1 }
 0x157   : > { %v2230_v45 = vpop.f32.mrf.mxu0  ;;  %5722 = vst [vmem:[#allocation18_spill] sm:$0xff] %v5445_v14 }
 0x159   : > { %v4107_v28 = vpop.f32.mrf.mxu0  ;;  %v5447_v21 = vpop.f32.mrf.mxu1 }
 0x15a   : > { %5723 = vst [vmem:[#allocation19_spill] sm:$0xff] %v5447_v21 }
 0x15b   : > { %v2243_v54 = vpop.f32.mrf.mxu0  ;;  %v5449_v49 = vpop.f32.mrf.mxu1 }
 0x15c   : > { %5724 = vst [vmem:[#allocation20_spill] sm:$0xff] %v5449_v49  ;;  %v1764_v49 = vadd.f32 %v1701_v62, %v5376_v9  ;;  %v1769_v9 = vadd.f32 %v1720_v20, %v5388_v18  ;;  %v1772_v62 = vadd.f32 %v1733_v50, %v5392_v39  ;;  %v1776_v18 = vadd.f32 %v1749_v37, %v5404_v3  ;;  %v5730_v20 = vld [vmem:[#allocation9_spill] sm:$0xff]  ;;  %v5732_v50 = vld [vmem:[#allocation11_spill] sm:$0xff] }
 0x15d   : > { %v4108_v8 = vpop.f32.mrf.mxu0  ;;  %v5453_v61 = vpop.f32.mrf.mxu1 }
 0x15e   : > { %5726 = vst [vmem:[#allocation22_spill] sm:$0xff] %v5453_v61  ;;  %v1765_v61 = vadd.f32 %v1704_v26, %v5380_v22  ;;  %v2053_v58 = vadd.f32 %v5402_v13, %v1764_v49  ;;  %v2057_v13 = vadd.f32 %v5417_v4, %v1768_v31  ;;  %v2061_v3 = vadd.f32 %v5425_v19, %v1772_v62  ;;  %v5733_v31 = vld [vmem:[#allocation12_spill] sm:$0xff]  ;;  %v5734_v19 = vld [vmem:[#allocation15_spill] sm:$0xff] }
 0x15f   : > { %v5451_v5 = vpop.f32.mrf.mxu0  ;;  %v5455_v41 = vpop.f32.mrf.mxu1  ;;  %v1777_v4 = vadd.f32 %v1752_v2, %v5730_v20  ;;  %v5735_v2 = vld [vmem:[#allocation16_spill] sm:$0xff] }
 0x160   : > { %5725 = vst [vmem:[#allocation21_spill] sm:$0xff] %v5451_v5  ;;  %5727 = vst [vmem:[#allocation23_spill] sm:$0xff] %v5455_v41  ;;  %v1767_v5 = vadd.f32 %v4052_v24, %v5378_v60  ;;  %v1774_v60 = vadd.f32 %v4059_v30, %v5390_v52  ;;  %v2054_v33 = vadd.f32 %v5411_v44, %v1765_v61 }
 0x161   : > { %v4111_v11 = vpop.f32.mrf.mxu0  ;;  %v5457_v16 = vpop.f32.mrf.mxu1  ;;  %v2294_v37 = vadd.f32 %v2243_v54, %v2057_v13 }
 0x162   : > { %5728 = vst [vmem:[#allocation24_spill] sm:$0xff] %v5457_v16  ;;  %v1770_v16 = vadd.f32 %v4055_v10, %v5382_v12  ;;  %v2056_v22 = vadd.f32 %v5406_v7, %v1767_v5  ;;  %v1775_v12 = vadd.f32 %v4060_v46, %v5394_v32  ;;  %v2292_v32 = vadd.f32 %v4103_v35, %v2055_v63  ;;  %v5737_v5 = vld [vmem:[#allocation13_spill] sm:$0xff] }
 0x163   : > { %v2259_v38 = vpop.f32.mrf.mxu0  ;;  %v5459_v53 = vpop.f32.mrf.mxu1  ;;  %v2058_v10 = vadd.f32 %v5421_v47, %v1769_v9  ;;  %v2063_v44 = vadd.f32 %v5423_v40, %v1774_v60  ;;  %v2067_v40 = vadd.f32 %v5732_v50, %v1778_v23  ;;  %v2065_v46 = vadd.f32 %v5733_v31, %v1776_v18 }
 0x164   : > { %5729 = vst [vmem:[#allocation25_spill] sm:$0xff] %v5459_v53  ;;  %v1771_v53 = vadd.f32 %v4056_v57, %v5386_v6  ;;  %v1773_v6 = vadd.f32 %v1736_v59, %v5396_v36  ;;  %v2059_v52 = vadd.f32 %v5415_v42, %v1770_v16  ;;  %v2290_v36 = vadd.f32 %v2227_v56, %v2053_v58 }
 0x165   : > { %v4112_v1 = vpop.f32.mrf.mxu0  ;;  %v5462_v21 = vpop.f32.mrf.mxu1  ;;  %v2293_v15 = vadd.f32 %v4104_v0, %v2056_v22  ;;  %v2064_v57 = vadd.f32 %v5427_v48, %v1775_v12  ;;  %v1779_v42 = vadd.f32 %v4064_v25, %v5408_v17  ;;  %v2291_v59 = vadd.f32 %v2230_v45, %v2054_v33  ;;  %v5738_v45 = vld [vmem:[#allocation14_spill] sm:$0xff]  ;;  %v5740_v33 = vld [vmem:[#allocation19_spill] sm:$0xff] }
 0x166   : > { %v2060_v39 = vadd.f32 %v5419_v43, %v1771_v53  ;;  %v5731_v43 = vld [vmem:[#allocation10_spill] sm:$0xff]  ;;  %v2709_v27 = vadd.f32 %v5734_v19, %v2292_v32  ;;  %v2296_v48 = vadd.f32 %v4107_v28, %v2059_v52  ;;  %v2707_v35 = vadd.f32 %v5735_v2, %v2290_v36  ;;  %v5736_v53 = vld [vmem:[#allocation17_spill] sm:$0xff] }
 0x167   : > { %v2262_v14 = vpop.f32.mrf.mxu0  ;;  %v5469_v41 = vpop.f32.mrf.mxu1  ;;  %v2062_v47 = vadd.f32 %v5731_v43, %v1773_v6  ;;  %v2710_v56 = vadd.f32 %v5736_v53, %v2293_v15  ;;  %v2300_v16 = vadd.f32 %v4111_v11, %v2063_v44  ;;  %v2298_v0 = vadd.f32 %v2259_v38, %v2061_v3  ;;  %v5739_v28 = vld [vmem:[#allocation18_spill] sm:$0xff]  ;;  %v5741_v11 = vld [vmem:[#allocation20_spill] sm:$0xff]  ;;  %v5743_v52 = vld [vmem:[#allocation21_spill] sm:$0xff] }
 0x168   : > { %v2297_v17 = vadd.f32 %v4108_v8, %v2060_v39  ;;  %v2068_v61 = vadd.f32 %v5737_v5, %v1779_v42  ;;  %v2066_v63 = vadd.f32 %v5738_v45, %v1777_v4  ;;  %v2301_v9 = vadd.f32 %v4112_v1, %v2064_v57  ;;  %v5742_v23 = vld [vmem:[#allocation22_spill] sm:$0xff] }
 0x169   : > { %v5466_v34 = vpop.f32.mrf.mxu0  ;;  %v2299_v60 = vadd.f32 %v2262_v14, %v2062_v47  ;;  %v2708_v54 = vadd.f32 %v5739_v28, %v2291_v59  ;;  %v2713_v6 = vadd.f32 %v5740_v33, %v2296_v48  ;;  %v2711_v38 = vadd.f32 %v5741_v11, %v2294_v37  ;;  %v5744_v32 = vld [vmem:[#allocation24_spill] sm:$0xff] }
 0x16a   : > { %v2714_v18 = vadd.f32 %v5742_v23, %v2297_v17  ;;  %v2295_v13 = vadd.f32 %v5743_v52, %v2058_v10  ;;  %v2717_v44 = vadd.f32 %v5744_v32, %v2300_v16  ;;  %v2718_v57 = vadd.f32 %v5462_v21, %v2301_v9 }
 0x16b   : > { %v5474_v55 = vpop.f32.mrf.mxu0  ;;  %v5489_v26 = vpop.f32.mrf.mxu1  ;;  %v5745_v1 = vld [vmem:[#allocation25_spill] sm:$0xff]  ;;  %v2716_v42 = vadd.f32 %v5469_v41, %v2299_v60  ;;  %v2304_v20 = vadd.f32 %v5466_v34, %v2067_v40 }
 0x16c   : > { %v2715_v14 = vadd.f32 %v5745_v1, %v2298_v0  ;;  %v2302_v4 = vadd.f32 %v5474_v55, %v2065_v46  ;;  %v5746_v0 = vld [vmem:[#allocation23_spill] sm:$0xff] }
 0x16d   : > { %v5483_v24 = vpop.f32.mrf.mxu0  ;;  %v5496_v29 = vpop.f32.mrf.mxu1  ;;  %v2712_v5 = vadd.f32 %v5746_v0, %v2295_v13 }
 0x16e   : > { %v2305_v59 = vadd.f32 %v5483_v24, %v2068_v61 }
 0x16f   : > { %v2278_v7 = vpop.f32.mrf.mxu0  ;;  %v5508_v51 = vpop.f32.mrf.mxu1 }
 0x170   : > { %v2303_v21 = vadd.f32 %v2278_v7, %v2066_v63 }
 0x171   : > { %v4155_v30 = vpop.f32.mrf.mxu0  ;;  %v5513_v49 = vpop.f32.mrf.mxu1 }
 0x172   : > { %v2998_v8 = vadd.f32 %v4155_v30, %v2709_v27 }
 0x173   : > { %v2933_v25 = vpop.f32.mrf.mxu0  ;;  %v4163_v22 = vpop.f32.mrf.mxu1 }
 0x174   : > { %v2996_v62 = vadd.f32 %v2933_v25, %v2707_v35  ;;  %v5533_v19 = vadd.f32 %v4163_v22, %v2717_v44  ;;  %v3116_v55 = vmul.f32 %v2998_v8, %v2998_v8 }
 0x175   : > { %v4156_v58 = vpop.f32.mrf.mxu0  ;;  %v2965_v36 = vpop.f32.mrf.mxu1 }
 0x176   : > { %v2999_v12 = vadd.f32 %v4156_v58, %v2710_v56  ;;  %v3114_v43 = vmul.f32 %v2996_v62, %v2996_v62  ;;  %v3004_v37 = vadd.f32 %v2965_v36, %v2715_v14 }
 0x177   : > { %v2936_v39 = vpop.f32.mrf.mxu0  ;;  %v4164_v10 = vpop.f32.mrf.mxu1 }
 0x178   : > { %v3779_v15 = vpack.c.bf16 %v2999_v12, %v2998_v8  ;;  %v2997_v3 = vadd.f32 %v2936_v39, %v2708_v54  ;;  %v5535_v41 = vadd.f32 %v4164_v10, %v2718_v57  ;;  %v3117_v17 = vmul.f32 %v2999_v12, %v2999_v12 }
 0x179   : > { %v4159_v30 = vpop.f32.mrf.mxu0  ;;  %v2968_v27 = vpop.f32.mrf.mxu1  ;;  %v2721_v54 = vadd.f32 %v5489_v26, %v2304_v20 }
 0x17a   : > { %3811 = vst [vmem:[%s5529_s6 + $0x8] sm:$0xff] %v3779_v15   ;;  %v3774_v47 = vpack.c.bf16 %v2997_v3, %v2996_v62  ;;  %v3092_v50 = vadd.f32 %v2997_v3, %v2996_v62  ;;  %v3115_v31 = vmul.f32 %v2997_v3, %v2997_v3  ;;  %v3799_v25 = vpack.c.bf16 %v5535_v41, %v5533_v19 }
 0x17b   : > { %v2949_v34 = vpop.f32.mrf.mxu0  ;;  %v5540_v2 = vadd.f32 %v2968_v27, %v2716_v42  ;;  %v3002_v35 = vadd.f32 %v4159_v30, %v2713_v6  ;;  %v4167_v53 = vpop.f32.mrf.mxu1  ;;  %v2719_v62 = vadd.f32 %v5496_v29, %v2302_v4  ;;  %v3122_v3 = vmul.f32 %v3004_v37, %v3004_v37 }
 0x17c   : > { %3775 = vst [vmem:[%s5529_s6] sm:$0xff] %v3774_v47   ;;  %v3093_v40 = vadd.f32 %v3092_v50, %v2998_v8  ;;  %v3130_v46 = vadd.f32 %v3115_v31, %v3114_v43  ;;  %v3000_v48 = vadd.f32 %v2949_v34, %v2711_v38  ;;  %3815 = vst [vmem:[%s5529_s6 + $0x28] sm:$0xff] %v3799_v25  }
 0x17d   : > { %v4160_v24 = vpop.f32.mrf.mxu0  ;;  %v3794_v61 = vpack.c.bf16 %v5540_v2, %v3004_v37  ;;  %v2981_v58 = vpop.f32.mrf.mxu1  ;;  %v2722_v8 = vadd.f32 %v5508_v51, %v2305_v59  ;;  %v5551_v11 = vadd.f32 %v4167_v53, %v2721_v54  ;;  %v3120_v39 = vmul.f32 %v3002_v35, %v3002_v35 }
 0x17e   : > { %v3131_v7 = vadd.f32 %v3130_v46, %v3116_v55  ;;  %v3094_v56 = vadd.f32 %v3093_v40, %v2999_v12  ;;  %v3003_v16 = vadd.f32 %v4160_v24, %v2714_v18  ;;  %v3118_v9 = vmul.f32 %v3000_v48, %v3000_v48 }
 0x17f   : > { %v2952_v45 = vpop.f32.mrf.mxu0  ;;  %3814 = vst [vmem:[%s5529_s6 + $0x20] sm:$0xff] %v3794_v61   ;;  %v2720_v12 = vadd.f32 %v5513_v49, %v2303_v21  ;;  %v4168_v6 = vpop.f32.mrf.mxu1  ;;  %v3008_v52 = vadd.f32 %v2981_v58, %v2719_v62 }
 0x180   : > { %v3095_v63 = vadd.f32 %v3094_v56, %v3000_v48  ;;  %v3132_v60 = vadd.f32 %v3131_v7, %v3117_v17  ;;  %v3789_v28 = vpack.c.bf16 %v3003_v16, %v3002_v35  ;;  %v3001_v22 = vadd.f32 %v2952_v45, %v2712_v5 }
 0x181   : > { %v5553_v38 = vadd.f32 %v4168_v6, %v2722_v8  ;;  %v2984_v51 = vpop.f32.mrf.mxu1  ;;  %v3121_v14 = vmul.f32 %v3003_v16, %v3003_v16 }
 0x182   : > { %v3133_v33 = vadd.f32 %v3132_v60, %v3118_v9  ;;  %3813 = vst [vmem:[%s5529_s6 + $0x18] sm:$0xff] %v3789_v28   ;;  %v3784_v23 = vpack.c.bf16 %v3001_v22, %v3000_v48  ;;  %v3096_v18 = vadd.f32 %v3095_v63, %v3001_v22  ;;  %v3119_v26 = vmul.f32 %v3001_v22, %v3001_v22 }
 0x183   : > { %v3809_v29 = vpack.c.bf16 %v5553_v38, %v5551_v11  ;;  %v3009_v13 = vadd.f32 %v2984_v51, %v2720_v12 }
 0x184   : > { %3812 = vst [vmem:[%s5529_s6 + $0x10] sm:$0xff] %v3784_v23   ;;  %v3097_v49 = vadd.f32 %v3096_v18, %v3002_v35  ;;  %v3134_v32 = vadd.f32 %v3133_v33, %v3119_v26 }
 0x185   : > { %3817 = vst [vmem:[%s5529_s6 + $0x38] sm:$0xff] %v3809_v29   ;;  %v3804_v1 = vpack.c.bf16 %v3009_v13, %v3008_v52 }
 0x186   : > { %v3098_v44 = vadd.f32 %v3097_v49, %v3003_v16  ;;  %v3135_v36 = vadd.f32 %v3134_v32, %v3120_v39 }
 0x187   : > { %3816 = vst [vmem:[%s5529_s6 + $0x30] sm:$0xff] %v3804_v1  }
 0x188   : > { %v3099_v15 = vadd.f32 %v3098_v44, %v3004_v37  ;;  %v3136_v57 = vadd.f32 %v3135_v36, %v3121_v14 }
 0x189   : > { %4339 = shalt.err (!%p4336_p5)
}
 0x18a   : > { %s4340_s30 = scalar_lea.hbm %s5563_s11, 1024  ;;  %s4344_s7 = scalar_lea.hbm %s5703_s2, 2048 }
 0x18b   : > { %p4341_p6 = scmp.ne.s32.totalorder %s5563_s11, %s4340_s30  ;;  %p4345_p10 = scmp.lt.s32.totalorder %s5563_s11, %s5703_s2 }
 0x18c   : > { %p4346_p11 = scmp.lt.s32.totalorder %s4344_s7, %s4340_s30 }
 0x18d   : > { %p4342_p7 = pnand %p4341_p6, %p4532_p4 }
 0x18e   : > { %p4347_p12 = por %p4346_p11, %p4345_p10 }
 0x18f   : > { %p4343_p9 = pneg %p4342_p7 }
 0x191   : > { %p4348_p13 = pnand %p4347_p12, %p4343_p9 }
 0x193   : > { %4351 = shalt.err (!%p4348_p13)
}
 0x194   : > { %s4461_s14 = smov 64   ;;  %s4462_s24 = smov 4   ;;  %v3100_v42 = vadd.f32 %v3099_v15, %v5540_v2  ;;  %v3123_v20 = vmul.f32 %v5540_v2, %v5540_v2  ;;  %v3137_v4 = vadd.f32 %v3136_v57, %v3122_v3  ;;  %v3124_v43 = vmul.f32 %v5533_v19, %v5533_v19 }
 0x195   : > { %4190 = dma.vmem_to_hbm [thread:$0]  (%p4532_p4), %s5565_s8, 1024, %s5563_s11, %s3153_s12, %s4461_s14, %s4461_s14, %s4462_s24   ;;  %v3125_v50 = vmul.f32 %v5535_v41, %v5535_v41  ;;  %v3126_v21 = vmul.f32 %v3008_v52, %v3008_v52  ;;  %v3127_v40 = vmul.f32 %v3009_v13, %v3009_v13 }
 0x196   : > { %v3101_v30 = vadd.f32 %v3100_v42, %v5533_v19  ;;  %v3138_v10 = vadd.f32 %v3137_v4, %v3123_v20  ;;  %v3128_v19 = vmul.f32 %v5551_v11, %v5551_v11  ;;  %s5609_s8 = sand.u32 1, %s3343_s21   ;;  %s3750_s11 = sshll.u32 %s4450_s18, 4 }
 0x197   : > { %s218_s12 = scalar_lea.vmem [#allocation4], %s5503_s13  ;;  %s224_s29 = scalar_lea.vmem [#allocation6], %s5503_s13 }
 0x198   : > { %v3102_v47 = vadd.f32 %v3101_v30, %v5535_v41  ;;  %v3139_v31 = vadd.f32 %v3138_v10, %v3124_v43  ;;  %v3129_v41 = vmul.f32 %v5553_v38, %v5553_v38  ;;  %s3194_s26 = sshll.u32 %s218_s12, 4  ;;  %s3208_s30 = sshll.u32 %s224_s29, 4  ;;  %s5621_s26 = int_to_ptr.vmem [resolvable:$true] %s3194_s26  ;;  %s5628_s30 = int_to_ptr.vmem [resolvable:$true] %s3208_s30 }
 0x199   : > { %s5619_s7 = scalar_lea.hbm %s5704_s3, %s3750_s11  ;;  %s5626_s9 = scalar_lea.hbm %s5705_s4, %s3750_s11 }
 0x19a   : > { %v3103_v59 = vadd.f32 %v3102_v47, %v3008_v52  ;;  %v3140_v34 = vadd.f32 %v3139_v31, %v3125_v50  ;;  %s3158_s10 = scalar_lea.sflag [#allocation5], %s5609_s8  ;;  %s4352_s14 = scalar_lea.vmem %s5621_s26, 16 }
 0x19b   : > { %p4353_p0 = scmp.ne.s32.totalorder %s5621_s26, %s4352_s14  ;;  %s4463_s24 = smov [#allocation4]  }
 0x19c   : > { %v3104_v55 = vadd.f32 %v3103_v59, %v3009_v13  ;;  %v3141_v46 = vadd.f32 %v3140_v34, %v3126_v21  ;;  %s4356_s5 = sshll.u32 %s4463_s24, 4  ;;  %s4357_s5 = int_to_ptr.vmem [resolvable:$false] %s4356_s5 }
 0x19d   : > { %p4354_p1 = pnand %p4353_p0, %p4532_p4  ;;  %s4358_s6 = scalar_lea.vmem %s4357_s5, 32 }
 0x19e   : > { %v3105_v27 = vadd.f32 %v3104_v55, %v5551_v11  ;;  %v3142_v48 = vadd.f32 %v3141_v46, %v3127_v40  ;;  %p4359_p3 = scmp.lt.s32.totalorder %s5621_s26, %s4357_s5  ;;  %p4360_p5 = scmp.lt.s32.totalorder %s4358_s6, %s4352_s14 }
 0x19f   : > { %p4355_p2 = pneg %p4354_p1 }
 0x1a0   : > { %v3106_v37 = vadd.f32 %v3105_v27, %v5553_v38  ;;  %v3143_v17 = vadd.f32 %v3142_v48, %v3128_v19  ;;  %p4361_p6 = por %p4360_p5, %p4359_p3 }
 0x1a2   : > { %v3107_v25 = vrot.slane %v3106_v37, 4  ;;  %v3144_v2 = vadd.f32 %v3143_v17, %v3129_v41  ;;  %p4362_p7 = pnand %p4361_p6, %p4355_p2 }
 0x1a4   : > { %v3108_v24 = vadd.f32 %v3107_v25, %v3106_v37  ;;  %v3145_v7 = vrot.slane %v3144_v2, 4 }
 0x1a6   : > { %v3109_v35 = vrot.slane %v3108_v24, 2  ;;  %v3146_v53 = vadd.f32 %v3145_v7, %v3144_v2 }
 0x1a8   : > { %v3110_v56 = vadd.f32 %v3109_v35, %v3108_v24  ;;  %v3147_v16 = vrot.slane %v3146_v53, 2 }
 0x1aa   : > { %v3111_v0 = vrot.slane %v3110_v56, 1  ;;  %v3148_v5 = vadd.f32 %v3147_v16, %v3146_v53 }
 0x1ac   : > { %v3112_v61 = vadd.f32 %v3111_v0, %v3110_v56  ;;  %v3149_v45 = vrot.slane %v3148_v5, 1 }
 0x1ae   : > { %3113 = vst [vmem:[%s218_s12] sm:$0x1] %v3112_v61 }
 0x1af   : > { %4365 = shalt.err (!%p4362_p7)
}
 0x1b0   : > { %s4366_s11 = scalar_lea.hbm %s5619_s7, 16  ;;  %s4370_s21 = scalar_lea.hbm %s5704_s3, 32 }
 0x1b1   : > { %p4367_p9 = scmp.ne.s32.totalorder %s5619_s7, %s4366_s11  ;;  %p4371_p12 = scmp.lt.s32.totalorder %s5619_s7, %s5704_s3 }
 0x1b2   : > { %p4372_p13 = scmp.lt.s32.totalorder %s4370_s21, %s4366_s11 }
 0x1b3   : > { %p4368_p10 = pnand %p4367_p9, %p4532_p4 }
 0x1b4   : > { %p4373_p0 = por %p4372_p13, %p4371_p12 }
 0x1b5   : > { %p4369_p11 = pneg %p4368_p10 }
 0x1b7   : > { %p4374_p1 = pnand %p4373_p0, %p4369_p11 }
 0x1b9   : > { %4377 = shalt.err (!%p4374_p1)
}
 0x1ba   : > { %4191 = dma.vmem_to_hbm [thread:$0]  (%p4532_p4), %s5621_s26, 16, %s5619_s7, %s3158_s10   ;;  %v3150_v63 = vadd.f32 %v3149_v45, %v3148_v5 }
 0x1bb   : > { %s4378_s22 = scalar_lea.vmem %s5628_s30, 16  ;;  %s4464_s14 = smov [#allocation6]  }
 0x1bc   : > { %3151 = vst [vmem:[%s224_s29] sm:$0x1] %v3150_v63  ;;  %p4379_p2 = scmp.ne.s32.totalorder %s5628_s30, %s4378_s22  ;;  %s4382_s5 = sshll.u32 %s4464_s14, 4  ;;  %s4383_s5 = int_to_ptr.vmem [resolvable:$false] %s4382_s5 }
 0x1bd   : > { %s4384_s6 = scalar_lea.vmem %s4383_s5, 32  ;;  %p4385_p6 = scmp.lt.s32.totalorder %s5628_s30, %s4383_s5 }
 0x1be   : > { %p4380_p3 = pnand %p4379_p2, %p4532_p4  ;;  %p4386_p7 = scmp.lt.s32.totalorder %s4384_s6, %s4378_s22 }
 0x1c0   : > { %p4381_p5 = pneg %p4380_p3  ;;  %p4387_p9 = por %p4386_p7, %p4385_p6 }
 0x1c2   : > { %p4388_p10 = pnand %p4387_p9, %p4381_p5 }
 0x1c4   : > { %4391 = shalt.err (!%p4388_p10)
}
 0x1c5   : > { %s4392_s13 = scalar_lea.hbm %s5626_s9, 16  ;;  %s4396_s7 = scalar_lea.hbm %s5705_s4, 32 }
 0x1c6   : > { %p4393_p11 = scmp.ne.s32.totalorder %s5626_s9, %s4392_s13  ;;  %p4397_p0 = scmp.lt.s32.totalorder %s5626_s9, %s5705_s4 }
 0x1c7   : > { %p4398_p1 = scmp.lt.s32.totalorder %s4396_s7, %s4392_s13 }
 0x1c8   : > { %p4394_p12 = pnand %p4393_p11, %p4532_p4 }
 0x1c9   : > { %p4399_p2 = por %p4398_p1, %p4397_p0 }
 0x1ca   : > { %p4395_p13 = pneg %p4394_p12 }
 0x1cc   : > { %p4400_p3 = pnand %p4399_p2, %p4395_p13 }
 0x1ce   : > { %4403 = shalt.err (!%p4400_p3)
}
 0x1cf   : > { %4192 = dma.vmem_to_hbm [thread:$0]  (%p4532_p4), %s5628_s30, 16, %s5626_s9, %s3158_s10  }
 0x1d0 PF: > { %p4206_p5 = scmp.ge.s32.totalorder %s4458_s20, 2  ;;  %s3220_s18 = sand.u32 1, %s4438_s15  }
 0x1d1   : > { %s3221_s21 = scalar_lea.sflag [#allocation3], %s3220_s18 }
 0x1d2   : > { %p4197_p6 = pnand %p4206_p5, %p4541_p8 }
 0x1d4   : > { %p4198_p7 = pneg %p4197_p6 }
 0x1d6   : > { %4429 = dma.done.wait (%p4198_p7), %s3221_s21, 1024  }
 0x1d7   : > { %4431 = vsyncadd (%p4198_p7), %s3221_s21, 4294966272  ;;  %s5747_s24 = sadd.s32 4294967294, %s4458_s20  }
 0x1d8   : > { %s3229_s25 = sand.u32 1, %s5747_s24  }
 0x1d9   : > { %s3230_s22 = scalar_lea.sflag [#allocation5], %s3229_s25 }
 0x1da   : > { %4433 = dma.done.wait (%p4198_p7), %s3230_s22, 32  }
 0x1db   : > { %4435 = vsyncadd (%p4198_p7), %s3230_s22, 4294967264  ;;  %s21_s20 = sadd.s32 1, %s4458_s20   ;;  %s5748_s15 = smov %s4442_s16 }
 0x1dc   : > { %p18_p4 = scmp.ge.s32.totalorder %s21_s20, 4   ;;  %s5749_s16 = smov %s4446_s17 }
 0x1dd   : > { %s5750_s17 = smov %s4547_s28  ;;  %s5751_s18 = smov %s4454_s19 }
 0x1de   : > { %s5752_s19 = smov %s5754_s23  ;;  %20 = sbr.rel (!%p18_p4) target bundleno = 6 (0x6), region = 106 }
 0x1e3   :  { %3242 = vsyncpa [#allocation3], 1 }
 0x1e4   :  { %3244 = vsyncpa [#allocation3 + $0x1], 1 }
 0x1e5   :  { %3245 = vsyncpa [#allocation5], 1 }
 0x1e6   :  { %3247 = vsyncpa [#allocation5 + $0x1], 1 }

</bundles_post_ra>
